<compile_context>
chip_gen: v7x
topology: tpu7x:2x2x1
jax: 0.10.0
libtpu: 0.0.40
codegen_flags: <defaults>
</compile_context>

<pallas_src>
import functools
import math

import jax
import jax.numpy as jnp
from jax.experimental import pallas as pl

# ---- small BERT config (scaled down from bert-base so it runs quickly) ----
VOCAB = 1000
HIDDEN = 32
NUM_LAYERS = 2
NUM_HEADS = 4
HEAD_DIM = HIDDEN // NUM_HEADS
INTERMEDIATE = 64
MAX_POS = 64
TYPE_VOCAB = 2
NUM_LABELS = 2
LOGITS_PAD = 128           # lane-dense output width (sliced back to NUM_LABELS)
LN_EPS = 1e-12
BATCH = 2
SEQ = 8

_INV_SQRT2 = 1.0 / math.sqrt(2.0)


# --------------------------- fused Pallas kernel -----------------------------

def _bert_kernel(emb_ref, bias_ref, eg_ref, eb_ref,
                 qkv_w_ref, qkv_b_ref,
                 ao_w_ref, ao_b_ref, ao_g_ref, ao_bt_ref,
                 i_w_ref, i_b_ref,
                 o_w_ref, o_b_ref, o_g_ref, o_bt_ref,
                 pool_w_ref, pool_b_ref, cls_w_ref, cls_b_ref,
                 logits_ref, *, batch, seq):
    """Whole BERT-for-sequence-classification forward on VMEM-resident data.

    emb_ref   : [B*S, H]       word+position+token-type embeddings (pre-LN)
    bias_ref  : [B*S, B*S]     block-diagonal additive attention bias
    *_w/_b    : packed / pre-transposed weights (see pack_params)
    logits_ref: [B, LOGITS_PAD] lane-dense output (valid logits in [:, :2])
    """
    num_layers = qkv_w_ref.shape[0]
    hidden = emb_ref.shape[1]

    def layer_norm(x, g, bt):
        # single pass: the two cross-lane reductions are independent
        n = x.shape[-1]
        s1 = jnp.sum(x, axis=-1, keepdims=True)
        s2 = jnp.sum(x * x, axis=-1, keepdims=True)
        mu = s1 * (1.0 / n)
        var = s2 * (1.0 / n) - mu * mu
        return (x - mu) * jax.lax.rsqrt(var + LN_EPS) * g + bt

    def gelu(x):            # exact erf-GELU, matches BERT
        return 0.5 * x * (1.0 + jax.lax.erf(x * _INV_SQRT2))

    # embeddings LayerNorm (embedding dropout: identity in eval mode)
    h = layer_norm(emb_ref[...], eg_ref[...], eb_ref[...])            # [B*S, H]
    attn_bias = bias_ref[...]                                         # [B*S, B*S]

    for l in range(num_layers):                     # static unroll (2 layers)
        # --- fused QKV projection (1/sqrt(d) pre-folded into Q weight/bias)
        qkv = jnp.dot(h, qkv_w_ref[l],
                      preferred_element_type=jnp.float32) + qkv_b_ref[l]
        q = qkv[:, 0 * hidden:1 * hidden]
        k = qkv[:, 1 * hidden:2 * hidden]
        v = qkv[:, 2 * hidden:3 * hidden]

        # --- attention over all batches at once (block-diag bias isolates
        #     batches); per-head context kept in vregs, no scratch stores.
        head_ctx = []
        for hd in range(NUM_HEADS):                 # static
            c0 = hd * HEAD_DIM
            qh = q[:, c0:c0 + HEAD_DIM]             # [B*S, D]
            kh = k[:, c0:c0 + HEAD_DIM]
            vh = v[:, c0:c0 + HEAD_DIM]
            # contract on last dim of both operands -> no kh.T transpose
            s = jax.lax.dot_general(
                qh, kh, (((1,), (1,)), ((), ())),
                preferred_element_type=jnp.float32) + attn_bias        # [BS,BS]
            s = s - jnp.max(s, axis=-1, keepdims=True)
            p = jnp.exp(s)
            p = p * pl.reciprocal(jnp.sum(p, axis=-1, keepdims=True),
                                  approx=True)
            head_ctx.append(jnp.dot(p, vh,
                                    preferred_element_type=jnp.float32))
        ctx = jnp.concatenate(head_ctx, axis=1)                        # [BS, H]

        # --- attention output projection + residual + LayerNorm (fused)
        attn_out = jnp.dot(ctx, ao_w_ref[l],
                           preferred_element_type=jnp.float32) + ao_b_ref[l]
        # attention output dropout: identity in eval mode
        h = layer_norm(attn_out + h, ao_g_ref[l], ao_bt_ref[l])

        # --- FFN: GELU linear, output linear + residual + LayerNorm (fused)
        inter = gelu(jnp.dot(h, i_w_ref[l],
                             preferred_element_type=jnp.float32) + i_b_ref[l])
        ffn = jnp.dot(inter, o_w_ref[l],
                      preferred_element_type=jnp.float32) + o_b_ref[l]
        # FFN output dropout: identity in eval mode
        h = layer_norm(ffn + h, o_g_ref[l], o_bt_ref[l])

    # --- fused pooler (tanh on [CLS] tokens) + classifier tail
    cls_rows = jnp.concatenate(
        [h[b * seq:b * seq + 1, :] for b in range(batch)], axis=0)     # [B, H]
    pooled = jnp.tanh(jnp.dot(cls_rows, pool_w_ref[...],
                              preferred_element_type=jnp.float32)
                      + pool_b_ref[...])
    # self.dropout(pooled_output): identity at inference
    logits_ref[...] = jnp.dot(pooled, cls_w_ref[...],
                              preferred_element_type=jnp.float32) + cls_b_ref[...]


# --------------------------- parameter init ---------------------------------

def init_params(key):
    """Parameters in PyTorch layout ([out_features, in_features] linears)."""
    std = 0.02
    keys = iter(jax.random.split(key, 256))

    def nrm(shape, s=std):
        return (s * jax.random.normal(next(keys), shape)).astype(jnp.float32)

    def zeros(shape):
        return jnp.zeros(shape, jnp.float32)

    def ones(shape):
        return jnp.ones(shape, jnp.float32)

    params = {
        "word_emb": nrm((VOCAB, HIDDEN)),
        "pos_emb": nrm((MAX_POS, HIDDEN)),
        "type_emb": nrm((TYPE_VOCAB, HIDDEN)),
        "emb_ln_g": ones((HIDDEN,)),
        "emb_ln_b": zeros((HIDDEN,)),
        "layers": [],
        "pool_w": nrm((HIDDEN, HIDDEN)),
        "pool_b": zeros((HIDDEN,)),
        # classifier: nn.init.xavier_normal_ on weight, zero bias
        "cls_w": (math.sqrt(2.0 / (HIDDEN + NUM_LABELS))
                  * jax.random.normal(next(keys), (NUM_LABELS, HIDDEN))
                  ).astype(jnp.float32),
        "cls_b": zeros((NUM_LABELS,)),
    }
    for _ in range(NUM_LAYERS):
        params["layers"].append({
            "q_w": nrm((HIDDEN, HIDDEN)), "q_b": zeros((HIDDEN,)),
            "k_w": nrm((HIDDEN, HIDDEN)), "k_b": zeros((HIDDEN,)),
            "v_w": nrm((HIDDEN, HIDDEN)), "v_b": zeros((HIDDEN,)),
            "ao_w": nrm((HIDDEN, HIDDEN)), "ao_b": zeros((HIDDEN,)),
            "ao_ln_g": ones((HIDDEN,)), "ao_ln_b": zeros((HIDDEN,)),
            "i_w": nrm((INTERMEDIATE, HIDDEN)), "i_b": zeros((INTERMEDIATE,)),
            "o_w": nrm((HIDDEN, INTERMEDIATE)), "o_b": zeros((HIDDEN,)),
            "o_ln_g": ones((HIDDEN,)), "o_ln_b": zeros((HIDDEN,)),
        })
    return params


def pack_params(p):
    """One-time packing: transpose to [in, out], concat QKV, fold 1/sqrt(d)
    into Q, stack per-layer weights along a leading layer axis, reshape
    biases / LN params to broadcastable [1, N] rows, and pad the classifier
    to a lane-dense 128-wide output."""
    inv = 1.0 / math.sqrt(HEAD_DIM)
    qkv_w, qkv_b = [], []
    ao_w, ao_b, ao_g, ao_bt = [], [], [], []
    i_w, i_b = [], []
    o_w, o_b, o_g, o_bt = [], [], [], []
    for lyr in p["layers"]:
        qw = lyr["q_w"].T * inv              # fold attention scale into Q
        kw = lyr["k_w"].T
        vw = lyr["v_w"].T
        qkv_w.append(jnp.concatenate([qw, kw, vw], axis=1))            # [H, 3H]
        qkv_b.append(jnp.concatenate(
            [lyr["q_b"] * inv, lyr["k_b"], lyr["v_b"]])[None, :])      # [1, 3H]
        ao_w.append(lyr["ao_w"].T)
        ao_b.append(lyr["ao_b"][None, :])
        ao_g.append(lyr["ao_ln_g"][None, :])
        ao_bt.append(lyr["ao_ln_b"][None, :])
        i_w.append(lyr["i_w"].T)
        i_b.append(lyr["i_b"][None, :])
        o_w.append(lyr["o_w"].T)
        o_b.append(lyr["o_b"][None, :])
        o_g.append(lyr["o_ln_g"][None, :])
        o_bt.append(lyr["o_ln_b"][None, :])

    # classifier padded to 128 output lanes (lane-dense store in the kernel)
    cls_w_pad = jnp.zeros((HIDDEN, LOGITS_PAD), jnp.float32)
    cls_w_pad = cls_w_pad.at[:, :NUM_LABELS].set(p["cls_w"].T)
    cls_b_pad = jnp.zeros((1, LOGITS_PAD), jnp.float32)
    cls_b_pad = cls_b_pad.at[:, :NUM_LABELS].set(p["cls_b"][None, :])

    return {
        "word_emb": p["word_emb"],
        "pos_emb": p["pos_emb"],
        "type_emb": p["type_emb"],
        "emb_ln_g": p["emb_ln_g"][None, :],
        "emb_ln_b": p["emb_ln_b"][None, :],
        "qkv_w": jnp.stack(qkv_w),           # [L, H, 3H]
        "qkv_b": jnp.stack(qkv_b),           # [L, 1, 3H]
        "ao_w": jnp.stack(ao_w),             # [L, H, H]
        "ao_b": jnp.stack(ao_b),             # [L, 1, H]
        "ao_ln_g": jnp.stack(ao_g),
        "ao_ln_b": jnp.stack(ao_bt),
        "i_w": jnp.stack(i_w),               # [L, H, I]
        "i_b": jnp.stack(i_b),               # [L, 1, I]
        "o_w": jnp.stack(o_w),               # [L, I, H]
        "o_b": jnp.stack(o_b),               # [L, 1, H]
        "o_ln_g": jnp.stack(o_g),
        "o_ln_b": jnp.stack(o_bt),
        "pool_w": p["pool_w"].T,             # [H, H]
        "pool_b": p["pool_b"][None, :],      # [1, H]
        "cls_w": cls_w_pad,                  # [H, LOGITS_PAD]
        "cls_b": cls_b_pad,                  # [1, LOGITS_PAD]
    }


# --------------------------- forward pass -----------------------------------

@jax.jit
def bert_for_sequence_classification(packed, input_ids,
                                     token_type_ids=None, attention_mask=None):
    B, S = input_ids.shape
    if token_type_ids is None:
        token_type_ids = jnp.zeros((B, S), jnp.int32)
    if attention_mask is None:
        attention_mask = jnp.ones((B, S), jnp.int32)

    # embedding gathers stay in XLA glue (data-dependent table lookups)
    we = jnp.take(packed["word_emb"], input_ids, axis=0)               # [B,S,H]
    te = jnp.take(packed["type_emb"], token_type_ids, axis=0)          # [B,S,H]
    pe = packed["pos_emb"][:S]                                         # [S,H]
    emb = (we + te + pe[None, :, :]).reshape(B * S, HIDDEN)

    # BERT extended attention mask, folded into a block-diagonal [B*S, B*S]
    # additive bias so all batches share one attention matmul per head.
    ext_mask = (1.0 - attention_mask.astype(jnp.float32)) * -10000.0   # [B,S]
    key_bias = ext_mask.reshape(B * S)                                 # [B*S]
    grp = jnp.arange(B * S, dtype=jnp.int32) // S
    same_batch = grp[:, None] == grp[None, :]                          # [BS,BS]
    attn_bias = jnp.where(same_batch, key_bias[None, :],
                          jnp.float32(-10000.0))                       # [BS,BS]

    kernel = functools.partial(_bert_kernel, batch=B, seq=S)

    # whole model in one zero-grid pallas_call; all operands fit in VMEM
    logits_padded = pl.pallas_call(
        kernel,
        out_shape=jax.ShapeDtypeStruct((B, LOGITS_PAD), jnp.float32),
    )(emb, attn_bias,
      packed["emb_ln_g"], packed["emb_ln_b"],
      packed["qkv_w"], packed["qkv_b"],
      packed["ao_w"], packed["ao_b"], packed["ao_ln_g"], packed["ao_ln_b"],
      packed["i_w"], packed["i_b"],
      packed["o_w"], packed["o_b"], packed["o_ln_g"], packed["o_ln_b"],
      packed["pool_w"], packed["pool_b"], packed["cls_w"], packed["cls_b"])

    return logits_padded[:, :NUM_LABELS]


# ------------------------------- main ----------------------------------------

if __name__ == "__main__":
    key = jax.random.PRNGKey(0)
    pkey, ikey, tkey = jax.random.split(key, 3)

    params = init_params(pkey)
    packed = pack_params(params)          # one-time transpose / QKV / pad packing

    input_ids = jax.random.randint(ikey, (BATCH, SEQ), 0, VOCAB, dtype=jnp.int32)
    token_type_ids = jax.random.randint(tkey, (BATCH, SEQ), 0, TYPE_VOCAB,
                                        dtype=jnp.int32)
    attention_mask = jnp.ones((BATCH, SEQ), jnp.int32)

    logits = bert_for_sequence_classification(packed, input_ids,
                                              token_type_ids, attention_mask)
    logits = jax.block_until_ready(logits)
    assert logits.shape == (BATCH, NUM_LABELS)
    assert bool(jnp.all(jnp.isfinite(logits)))
    print("KERNEL_OK")
</pallas_src>

<mosaic_0001>
module attributes {stable_mosaic.version = 11 : i64} {
  func.func @_bert_kernel(%arg0: memref<16x32xf32, #tpu.memory_space<vmem>>, %arg1: memref<16x16xf32, #tpu.memory_space<vmem>>, %arg2: memref<1x32xf32, #tpu.memory_space<vmem>>, %arg3: memref<1x32xf32, #tpu.memory_space<vmem>>, %arg4: memref<2x32x96xf32, #tpu.memory_space<vmem>>, %arg5: memref<2x1x96xf32, #tpu.memory_space<vmem>>, %arg6: memref<2x32x32xf32, #tpu.memory_space<vmem>>, %arg7: memref<2x1x32xf32, #tpu.memory_space<vmem>>, %arg8: memref<2x1x32xf32, #tpu.memory_space<vmem>>, %arg9: memref<2x1x32xf32, #tpu.memory_space<vmem>>, %arg10: memref<2x32x64xf32, #tpu.memory_space<vmem>>, %arg11: memref<2x1x64xf32, #tpu.memory_space<vmem>>, %arg12: memref<2x64x32xf32, #tpu.memory_space<vmem>>, %arg13: memref<2x1x32xf32, #tpu.memory_space<vmem>>, %arg14: memref<2x1x32xf32, #tpu.memory_space<vmem>>, %arg15: memref<2x1x32xf32, #tpu.memory_space<vmem>>, %arg16: memref<32x32xf32, #tpu.memory_space<vmem>>, %arg17: memref<1x32xf32, #tpu.memory_space<vmem>>, %arg18: memref<32x128xf32, #tpu.memory_space<vmem>>, %arg19: memref<1x128xf32, #tpu.memory_space<vmem>>, %arg20: memref<2x128xf32, #tpu.memory_space<vmem>>) attributes {dimension_semantics = [], scalar_prefetch = 0 : i64, scratch_operands = 0 : i64, tpu.core_type = #tpu.core_type<tc>} {
    %c0 = arith.constant 0 : index
    %c0_0 = arith.constant 0 : index
    %0 = vector.load %arg0[%c0, %c0_0] : memref<16x32xf32, #tpu.memory_space<vmem>>, vector<16x32xf32>
    %c0_1 = arith.constant 0 : index
    %c0_2 = arith.constant 0 : index
    %1 = vector.load %arg2[%c0_1, %c0_2] : memref<1x32xf32, #tpu.memory_space<vmem>>, vector<1x32xf32>
    %c0_3 = arith.constant 0 : index
    %c0_4 = arith.constant 0 : index
    %2 = vector.load %arg3[%c0_3, %c0_4] : memref<1x32xf32, #tpu.memory_space<vmem>>, vector<1x32xf32>
    %cst = arith.constant dense<0.000000e+00> : vector<16xf32>
    %3 = vector.multi_reduction <add>, %0, %cst [1] : vector<16x32xf32> to vector<16xf32>
    %4 = vector.shape_cast %3 : vector<16xf32> to vector<16x1xf32>
    %5 = arith.mulf %0, %0 : vector<16x32xf32>
    %cst_5 = arith.constant dense<0.000000e+00> : vector<16xf32>
    %6 = vector.multi_reduction <add>, %5, %cst_5 [1] : vector<16x32xf32> to vector<16xf32>
    %7 = vector.shape_cast %6 : vector<16xf32> to vector<16x1xf32>
    %cst_6 = arith.constant 3.125000e-02 : f32
    %8 = vector.broadcast %cst_6 : f32 to vector<16x1xf32>
    %9 = arith.mulf %4, %8 : vector<16x1xf32>
    %cst_7 = arith.constant 3.125000e-02 : f32
    %10 = vector.broadcast %cst_7 : f32 to vector<16x1xf32>
    %11 = arith.mulf %7, %10 : vector<16x1xf32>
    %12 = arith.mulf %9, %9 : vector<16x1xf32>
    %13 = arith.subf %11, %12 : vector<16x1xf32>
    %14 = vector.broadcast %9 : vector<16x1xf32> to vector<16x32xf32>
    %15 = arith.subf %0, %14 : vector<16x32xf32>
    %cst_8 = arith.constant 9.99999996E-13 : f32
    %16 = vector.broadcast %cst_8 : f32 to vector<16x1xf32>
    %17 = arith.addf %13, %16 : vector<16x1xf32>
    %18 = math.rsqrt %17 : vector<16x1xf32>
    %19 = vector.broadcast %18 : vector<16x1xf32> to vector<16x32xf32>
    %20 = arith.mulf %15, %19 : vector<16x32xf32>
    %21 = vector.broadcast %1 : vector<1x32xf32> to vector<16x32xf32>
    %22 = arith.mulf %20, %21 : vector<16x32xf32>
    %23 = vector.broadcast %2 : vector<1x32xf32> to vector<16x32xf32>
    %24 = arith.addf %22, %23 : vector<16x32xf32>
    %c0_9 = arith.constant 0 : index
    %c0_10 = arith.constant 0 : index
    %25 = vector.load %arg1[%c0_9, %c0_10] : memref<16x16xf32, #tpu.memory_space<vmem>>, vector<16x16xf32>
    %c0_11 = arith.constant 0 : index
    %c0_12 = arith.constant 0 : index
    %c0_13 = arith.constant 0 : index
    %26 = vector.load %arg4[%c0_11, %c0_12, %c0_13] : memref<2x32x96xf32, #tpu.memory_space<vmem>>, vector<1x32x96xf32>
    %27 = vector.shape_cast %26 : vector<1x32x96xf32> to vector<32x96xf32>
    %cst_14 = arith.constant dense<0.000000e+00> : vector<16x96xf32>
    %28 = tpu.matmul %24, %27, %cst_14 {dimension_numbers = #tpu.dot_dimension_numbers<[1], [0], [0], [1], [0, 0, 1, 1], [], []>} : vector<16x32xf32>, vector<32x96xf32>, vector<16x96xf32> -> vector<16x96xf32>
    %c0_15 = arith.constant 0 : index
    %c0_16 = arith.constant 0 : index
    %c0_17 = arith.constant 0 : index
    %29 = vector.load %arg5[%c0_15, %c0_16, %c0_17] : memref<2x1x96xf32, #tpu.memory_space<vmem>>, vector<1x1x96xf32>
    %30 = vector.shape_cast %29 : vector<1x1x96xf32> to vector<1x96xf32>
    %31 = vector.broadcast %30 : vector<1x96xf32> to vector<16x96xf32>
    %32 = arith.addf %28, %31 : vector<16x96xf32>
    %33 = vector.extract_strided_slice %32 {offsets = [0, 0], sizes = [16, 32], strides = [1, 1]} : vector<16x96xf32> to vector<16x32xf32>
    %34 = vector.extract_strided_slice %32 {offsets = [0, 32], sizes = [16, 32], strides = [1, 1]} : vector<16x96xf32> to vector<16x32xf32>
    %35 = vector.extract_strided_slice %32 {offsets = [0, 64], sizes = [16, 32], strides = [1, 1]} : vector<16x96xf32> to vector<16x32xf32>
    %36 = vector.extract_strided_slice %33 {offsets = [0, 0], sizes = [16, 8], strides = [1, 1]} : vector<16x32xf32> to vector<16x8xf32>
    %37 = vector.extract_strided_slice %34 {offsets = [0, 0], sizes = [16, 8], strides = [1, 1]} : vector<16x32xf32> to vector<16x8xf32>
    %38 = vector.extract_strided_slice %35 {offsets = [0, 0], sizes = [16, 8], strides = [1, 1]} : vector<16x32xf32> to vector<16x8xf32>
    %cst_18 = arith.constant dense<0.000000e+00> : vector<16x16xf32>
    %39 = tpu.matmul %36, %37, %cst_18 {dimension_numbers = #tpu.dot_dimension_numbers<[1], [1], [0], [0], [0, 0, 1, 0], [], []>} : vector<16x8xf32>, vector<16x8xf32>, vector<16x16xf32> -> vector<16x16xf32>
    %40 = arith.addf %39, %25 : vector<16x16xf32>
    %cst_19 = arith.constant dense<0xFF800000> : vector<16xf32>
    %41 = vector.multi_reduction <maximumf>, %40, %cst_19 [1] : vector<16x16xf32> to vector<16xf32>
    %42 = vector.shape_cast %41 : vector<16xf32> to vector<16x1xf32>
    %43 = vector.broadcast %42 : vector<16x1xf32> to vector<16x16xf32>
    %44 = arith.subf %40, %43 : vector<16x16xf32>
    %45 = math.exp %44 : vector<16x16xf32>
    %cst_20 = arith.constant dense<0.000000e+00> : vector<16xf32>
    %46 = vector.multi_reduction <add>, %45, %cst_20 [1] : vector<16x16xf32> to vector<16xf32>
    %47 = vector.shape_cast %46 : vector<16xf32> to vector<16x1xf32>
    %48 = tpu.reciprocal %47 {approx = true} : vector<16x1xf32> -> vector<16x1xf32>
    %49 = vector.broadcast %48 : vector<16x1xf32> to vector<16x16xf32>
    %50 = arith.mulf %45, %49 : vector<16x16xf32>
    %cst_21 = arith.constant dense<0.000000e+00> : vector<16x8xf32>
    %51 = tpu.matmul %50, %38, %cst_21 {dimension_numbers = #tpu.dot_dimension_numbers<[1], [0], [0], [1], [0, 0, 1, 1], [], []>} : vector<16x16xf32>, vector<16x8xf32>, vector<16x8xf32> -> vector<16x8xf32>
    %52 = vector.extract_strided_slice %33 {offsets = [0, 8], sizes = [16, 8], strides = [1, 1]} : vector<16x32xf32> to vector<16x8xf32>
    %53 = vector.extract_strided_slice %34 {offsets = [0, 8], sizes = [16, 8], strides = [1, 1]} : vector<16x32xf32> to vector<16x8xf32>
    %54 = vector.extract_strided_slice %35 {offsets = [0, 8], sizes = [16, 8], strides = [1, 1]} : vector<16x32xf32> to vector<16x8xf32>
    %cst_22 = arith.constant dense<0.000000e+00> : vector<16x16xf32>
    %55 = tpu.matmul %52, %53, %cst_22 {dimension_numbers = #tpu.dot_dimension_numbers<[1], [1], [0], [0], [0, 0, 1, 0], [], []>} : vector<16x8xf32>, vector<16x8xf32>, vector<16x16xf32> -> vector<16x16xf32>
    %56 = arith.addf %55, %25 : vector<16x16xf32>
    %cst_23 = arith.constant dense<0xFF800000> : vector<16xf32>
    %57 = vector.multi_reduction <maximumf>, %56, %cst_23 [1] : vector<16x16xf32> to vector<16xf32>
    %58 = vector.shape_cast %57 : vector<16xf32> to vector<16x1xf32>
    %59 = vector.broadcast %58 : vector<16x1xf32> to vector<16x16xf32>
    %60 = arith.subf %56, %59 : vector<16x16xf32>
    %61 = math.exp %60 : vector<16x16xf32>
    %cst_24 = arith.constant dense<0.000000e+00> : vector<16xf32>
    %62 = vector.multi_reduction <add>, %61, %cst_24 [1] : vector<16x16xf32> to vector<16xf32>
    %63 = vector.shape_cast %62 : vector<16xf32> to vector<16x1xf32>
    %64 = tpu.reciprocal %63 {approx = true} : vector<16x1xf32> -> vector<16x1xf32>
    %65 = vector.broadcast %64 : vector<16x1xf32> to vector<16x16xf32>
    %66 = arith.mulf %61, %65 : vector<16x16xf32>
    %cst_25 = arith.constant dense<0.000000e+00> : vector<16x8xf32>
    %67 = tpu.matmul %66, %54, %cst_25 {dimension_numbers = #tpu.dot_dimension_numbers<[1], [0], [0], [1], [0, 0, 1, 1], [], []>} : vector<16x16xf32>, vector<16x8xf32>, vector<16x8xf32> -> vector<16x8xf32>
    %68 = vector.extract_strided_slice %33 {offsets = [0, 16], sizes = [16, 8], strides = [1, 1]} : vector<16x32xf32> to vector<16x8xf32>
    %69 = vector.extract_strided_slice %34 {offsets = [0, 16], sizes = [16, 8], strides = [1, 1]} : vector<16x32xf32> to vector<16x8xf32>
    %70 = vector.extract_strided_slice %35 {offsets = [0, 16], sizes = [16, 8], strides = [1, 1]} : vector<16x32xf32> to vector<16x8xf32>
    %cst_26 = arith.constant dense<0.000000e+00> : vector<16x16xf32>
    %71 = tpu.matmul %68, %69, %cst_26 {dimension_numbers = #tpu.dot_dimension_numbers<[1], [1], [0], [0], [0, 0, 1, 0], [], []>} : vector<16x8xf32>, vector<16x8xf32>, vector<16x16xf32> -> vector<16x16xf32>
    %72 = arith.addf %71, %25 : vector<16x16xf32>
    %cst_27 = arith.constant dense<0xFF800000> : vector<16xf32>
    %73 = vector.multi_reduction <maximumf>, %72, %cst_27 [1] : vector<16x16xf32> to vector<16xf32>
    %74 = vector.shape_cast %73 : vector<16xf32> to vector<16x1xf32>
    %75 = vector.broadcast %74 : vector<16x1xf32> to vector<16x16xf32>
    %76 = arith.subf %72, %75 : vector<16x16xf32>
    %77 = math.exp %76 : vector<16x16xf32>
    %cst_28 = arith.constant dense<0.000000e+00> : vector<16xf32>
    %78 = vector.multi_reduction <add>, %77, %cst_28 [1] : vector<16x16xf32> to vector<16xf32>
    %79 = vector.shape_cast %78 : vector<16xf32> to vector<16x1xf32>
    %80 = tpu.reciprocal %79 {approx = true} : vector<16x1xf32> -> vector<16x1xf32>
    %81 = vector.broadcast %80 : vector<16x1xf32> to vector<16x16xf32>
    %82 = arith.mulf %77, %81 : vector<16x16xf32>
    %cst_29 = arith.constant dense<0.000000e+00> : vector<16x8xf32>
    %83 = tpu.matmul %82, %70, %cst_29 {dimension_numbers = #tpu.dot_dimension_numbers<[1], [0], [0], [1], [0, 0, 1, 1], [], []>} : vector<16x16xf32>, vector<16x8xf32>, vector<16x8xf32> -> vector<16x8xf32>
    %84 = vector.extract_strided_slice %33 {offsets = [0, 24], sizes = [16, 8], strides = [1, 1]} : vector<16x32xf32> to vector<16x8xf32>
    %85 = vector.extract_strided_slice %34 {offsets = [0, 24], sizes = [16, 8], strides = [1, 1]} : vector<16x32xf32> to vector<16x8xf32>
    %86 = vector.extract_strided_slice %35 {offsets = [0, 24], sizes = [16, 8], strides = [1, 1]} : vector<16x32xf32> to vector<16x8xf32>
    %cst_30 = arith.constant dense<0.000000e+00> : vector<16x16xf32>
    %87 = tpu.matmul %84, %85, %cst_30 {dimension_numbers = #tpu.dot_dimension_numbers<[1], [1], [0], [0], [0, 0, 1, 0], [], []>} : vector<16x8xf32>, vector<16x8xf32>, vector<16x16xf32> -> vector<16x16xf32>
    %88 = arith.addf %87, %25 : vector<16x16xf32>
    %cst_31 = arith.constant dense<0xFF800000> : vector<16xf32>
    %89 = vector.multi_reduction <maximumf>, %88, %cst_31 [1] : vector<16x16xf32> to vector<16xf32>
    %90 = vector.shape_cast %89 : vector<16xf32> to vector<16x1xf32>
    %91 = vector.broadcast %90 : vector<16x1xf32> to vector<16x16xf32>
    %92 = arith.subf %88, %91 : vector<16x16xf32>
    %93 = math.exp %92 : vector<16x16xf32>
    %cst_32 = arith.constant dense<0.000000e+00> : vector<16xf32>
    %94 = vector.multi_reduction <add>, %93, %cst_32 [1] : vector<16x16xf32> to vector<16xf32>
    %95 = vector.shape_cast %94 : vector<16xf32> to vector<16x1xf32>
    %96 = tpu.reciprocal %95 {approx = true} : vector<16x1xf32> -> vector<16x1xf32>
    %97 = vector.broadcast %96 : vector<16x1xf32> to vector<16x16xf32>
    %98 = arith.mulf %93, %97 : vector<16x16xf32>
    %cst_33 = arith.constant dense<0.000000e+00> : vector<16x8xf32>
    %99 = tpu.matmul %98, %86, %cst_33 {dimension_numbers = #tpu.dot_dimension_numbers<[1], [0], [0], [1], [0, 0, 1, 1], [], []>} : vector<16x16xf32>, vector<16x8xf32>, vector<16x8xf32> -> vector<16x8xf32>
    %100 = tpu.concatenate %51, %67, %83, %99 in 1 : vector<16x8xf32>, vector<16x8xf32>, vector<16x8xf32>, vector<16x8xf32> -> vector<16x32xf32>
    %c0_34 = arith.constant 0 : index
    %c0_35 = arith.constant 0 : index
    %c0_36 = arith.constant 0 : index
    %101 = vector.load %arg6[%c0_34, %c0_35, %c0_36] : memref<2x32x32xf32, #tpu.memory_space<vmem>>, vector<1x32x32xf32>
    %102 = vector.shape_cast %101 : vector<1x32x32xf32> to vector<32x32xf32>
    %cst_37 = arith.constant dense<0.000000e+00> : vector<16x32xf32>
    %103 = tpu.matmul %100, %102, %cst_37 {dimension_numbers = #tpu.dot_dimension_numbers<[1], [0], [0], [1], [0, 0, 1, 1], [], []>} : vector<16x32xf32>, vector<32x32xf32>, vector<16x32xf32> -> vector<16x32xf32>
    %c0_38 = arith.constant 0 : index
    %c0_39 = arith.constant 0 : index
    %c0_40 = arith.constant 0 : index
    %104 = vector.load %arg7[%c0_38, %c0_39, %c0_40] : memref<2x1x32xf32, #tpu.memory_space<vmem>>, vector<1x1x32xf32>
    %105 = vector.shape_cast %104 : vector<1x1x32xf32> to vector<1x32xf32>
    %106 = vector.broadcast %105 : vector<1x32xf32> to vector<16x32xf32>
    %107 = arith.addf %103, %106 : vector<16x32xf32>
    %108 = arith.addf %107, %24 : vector<16x32xf32>
    %c0_41 = arith.constant 0 : index
    %c0_42 = arith.constant 0 : index
    %c0_43 = arith.constant 0 : index
    %109 = vector.load %arg8[%c0_41, %c0_42, %c0_43] : memref<2x1x32xf32, #tpu.memory_space<vmem>>, vector<1x1x32xf32>
    %110 = vector.shape_cast %109 : vector<1x1x32xf32> to vector<1x32xf32>
    %c0_44 = arith.constant 0 : index
    %c0_45 = arith.constant 0 : index
    %c0_46 = arith.constant 0 : index
    %111 = vector.load %arg9[%c0_44, %c0_45, %c0_46] : memref<2x1x32xf32, #tpu.memory_space<vmem>>, vector<1x1x32xf32>
    %112 = vector.shape_cast %111 : vector<1x1x32xf32> to vector<1x32xf32>
    %cst_47 = arith.constant dense<0.000000e+00> : vector<16xf32>
    %113 = vector.multi_reduction <add>, %108, %cst_47 [1] : vector<16x32xf32> to vector<16xf32>
    %114 = vector.shape_cast %113 : vector<16xf32> to vector<16x1xf32>
    %115 = arith.mulf %108, %108 : vector<16x32xf32>
    %cst_48 = arith.constant dense<0.000000e+00> : vector<16xf32>
    %116 = vector.multi_reduction <add>, %115, %cst_48 [1] : vector<16x32xf32> to vector<16xf32>
    %117 = vector.shape_cast %116 : vector<16xf32> to vector<16x1xf32>
    %cst_49 = arith.constant 3.125000e-02 : f32
    %118 = vector.broadcast %cst_49 : f32 to vector<16x1xf32>
    %119 = arith.mulf %114, %118 : vector<16x1xf32>
    %cst_50 = arith.constant 3.125000e-02 : f32
    %120 = vector.broadcast %cst_50 : f32 to vector<16x1xf32>
    %121 = arith.mulf %117, %120 : vector<16x1xf32>
    %122 = arith.mulf %119, %119 : vector<16x1xf32>
    %123 = arith.subf %121, %122 : vector<16x1xf32>
    %124 = vector.broadcast %119 : vector<16x1xf32> to vector<16x32xf32>
    %125 = arith.subf %108, %124 : vector<16x32xf32>
    %cst_51 = arith.constant 9.99999996E-13 : f32
    %126 = vector.broadcast %cst_51 : f32 to vector<16x1xf32>
    %127 = arith.addf %123, %126 : vector<16x1xf32>
    %128 = math.rsqrt %127 : vector<16x1xf32>
    %129 = vector.broadcast %128 : vector<16x1xf32> to vector<16x32xf32>
    %130 = arith.mulf %125, %129 : vector<16x32xf32>
    %131 = vector.broadcast %110 : vector<1x32xf32> to vector<16x32xf32>
    %132 = arith.mulf %130, %131 : vector<16x32xf32>
    %133 = vector.broadcast %112 : vector<1x32xf32> to vector<16x32xf32>
    %134 = arith.addf %132, %133 : vector<16x32xf32>
    %c0_52 = arith.constant 0 : index
    %c0_53 = arith.constant 0 : index
    %c0_54 = arith.constant 0 : index
    %135 = vector.load %arg10[%c0_52, %c0_53, %c0_54] : memref<2x32x64xf32, #tpu.memory_space<vmem>>, vector<1x32x64xf32>
    %136 = vector.shape_cast %135 : vector<1x32x64xf32> to vector<32x64xf32>
    %cst_55 = arith.constant dense<0.000000e+00> : vector<16x64xf32>
    %137 = tpu.matmul %134, %136, %cst_55 {dimension_numbers = #tpu.dot_dimension_numbers<[1], [0], [0], [1], [0, 0, 1, 1], [], []>} : vector<16x32xf32>, vector<32x64xf32>, vector<16x64xf32> -> vector<16x64xf32>
    %c0_56 = arith.constant 0 : index
    %c0_57 = arith.constant 0 : index
    %c0_58 = arith.constant 0 : index
    %138 = vector.load %arg11[%c0_56, %c0_57, %c0_58] : memref<2x1x64xf32, #tpu.memory_space<vmem>>, vector<1x1x64xf32>
    %139 = vector.shape_cast %138 : vector<1x1x64xf32> to vector<1x64xf32>
    %140 = vector.broadcast %139 : vector<1x64xf32> to vector<16x64xf32>
    %141 = arith.addf %137, %140 : vector<16x64xf32>
    %cst_59 = arith.constant 5.000000e-01 : f32
    %142 = vector.broadcast %cst_59 : f32 to vector<16x64xf32>
    %143 = arith.mulf %142, %141 : vector<16x64xf32>
    %cst_60 = arith.constant 0.707106769 : f32
    %144 = vector.broadcast %cst_60 : f32 to vector<16x64xf32>
    %145 = arith.mulf %141, %144 : vector<16x64xf32>
    %146 = math.erf %145 : vector<16x64xf32>
    %cst_61 = arith.constant 1.000000e+00 : f32
    %147 = vector.broadcast %cst_61 : f32 to vector<16x64xf32>
    %148 = arith.addf %147, %146 : vector<16x64xf32>
    %149 = arith.mulf %143, %148 : vector<16x64xf32>
    %c0_62 = arith.constant 0 : index
    %c0_63 = arith.constant 0 : index
    %c0_64 = arith.constant 0 : index
    %150 = vector.load %arg12[%c0_62, %c0_63, %c0_64] : memref<2x64x32xf32, #tpu.memory_space<vmem>>, vector<1x64x32xf32>
    %151 = vector.shape_cast %150 : vector<1x64x32xf32> to vector<64x32xf32>
    %cst_65 = arith.constant dense<0.000000e+00> : vector<16x32xf32>
    %152 = tpu.matmul %149, %151, %cst_65 {dimension_numbers = #tpu.dot_dimension_numbers<[1], [0], [0], [1], [0, 0, 1, 1], [], []>} : vector<16x64xf32>, vector<64x32xf32>, vector<16x32xf32> -> vector<16x32xf32>
    %c0_66 = arith.constant 0 : index
    %c0_67 = arith.constant 0 : index
    %c0_68 = arith.constant 0 : index
    %153 = vector.load %arg13[%c0_66, %c0_67, %c0_68] : memref<2x1x32xf32, #tpu.memory_space<vmem>>, vector<1x1x32xf32>
    %154 = vector.shape_cast %153 : vector<1x1x32xf32> to vector<1x32xf32>
    %155 = vector.broadcast %154 : vector<1x32xf32> to vector<16x32xf32>
    %156 = arith.addf %152, %155 : vector<16x32xf32>
    %157 = arith.addf %156, %134 : vector<16x32xf32>
    %c0_69 = arith.constant 0 : index
    %c0_70 = arith.constant 0 : index
    %c0_71 = arith.constant 0 : index
    %158 = vector.load %arg14[%c0_69, %c0_70, %c0_71] : memref<2x1x32xf32, #tpu.memory_space<vmem>>, vector<1x1x32xf32>
    %159 = vector.shape_cast %158 : vector<1x1x32xf32> to vector<1x32xf32>
    %c0_72 = arith.constant 0 : index
    %c0_73 = arith.constant 0 : index
    %c0_74 = arith.constant 0 : index
    %160 = vector.load %arg15[%c0_72, %c0_73, %c0_74] : memref<2x1x32xf32, #tpu.memory_space<vmem>>, vector<1x1x32xf32>
    %161 = vector.shape_cast %160 : vector<1x1x32xf32> to vector<1x32xf32>
    %cst_75 = arith.constant dense<0.000000e+00> : vector<16xf32>
    %162 = vector.multi_reduction <add>, %157, %cst_75 [1] : vector<16x32xf32> to vector<16xf32>
    %163 = vector.shape_cast %162 : vector<16xf32> to vector<16x1xf32>
    %164 = arith.mulf %157, %157 : vector<16x32xf32>
    %cst_76 = arith.constant dense<0.000000e+00> : vector<16xf32>
    %165 = vector.multi_reduction <add>, %164, %cst_76 [1] : vector<16x32xf32> to vector<16xf32>
    %166 = vector.shape_cast %165 : vector<16xf32> to vector<16x1xf32>
    %cst_77 = arith.constant 3.125000e-02 : f32
    %167 = vector.broadcast %cst_77 : f32 to vector<16x1xf32>
    %168 = arith.mulf %163, %167 : vector<16x1xf32>
    %cst_78 = arith.constant 3.125000e-02 : f32
    %169 = vector.broadcast %cst_78 : f32 to vector<16x1xf32>
    %170 = arith.mulf %166, %169 : vector<16x1xf32>
    %171 = arith.mulf %168, %168 : vector<16x1xf32>
    %172 = arith.subf %170, %171 : vector<16x1xf32>
    %173 = vector.broadcast %168 : vector<16x1xf32> to vector<16x32xf32>
    %174 = arith.subf %157, %173 : vector<16x32xf32>
    %cst_79 = arith.constant 9.99999996E-13 : f32
    %175 = vector.broadcast %cst_79 : f32 to vector<16x1xf32>
    %176 = arith.addf %172, %175 : vector<16x1xf32>
    %177 = math.rsqrt %176 : vector<16x1xf32>
    %178 = vector.broadcast %177 : vector<16x1xf32> to vector<16x32xf32>
    %179 = arith.mulf %174, %178 : vector<16x32xf32>
    %180 = vector.broadcast %159 : vector<1x32xf32> to vector<16x32xf32>
    %181 = arith.mulf %179, %180 : vector<16x32xf32>
    %182 = vector.broadcast %161 : vector<1x32xf32> to vector<16x32xf32>
    %183 = arith.addf %181, %182 : vector<16x32xf32>
    %c1 = arith.constant 1 : index
    %c0_80 = arith.constant 0 : index
    %c0_81 = arith.constant 0 : index
    %184 = vector.load %arg4[%c1, %c0_80, %c0_81] : memref<2x32x96xf32, #tpu.memory_space<vmem>>, vector<1x32x96xf32>
    %185 = vector.shape_cast %184 : vector<1x32x96xf32> to vector<32x96xf32>
    %cst_82 = arith.constant dense<0.000000e+00> : vector<16x96xf32>
    %186 = tpu.matmul %183, %185, %cst_82 {dimension_numbers = #tpu.dot_dimension_numbers<[1], [0], [0], [1], [0, 0, 1, 1], [], []>} : vector<16x32xf32>, vector<32x96xf32>, vector<16x96xf32> -> vector<16x96xf32>
    %c1_83 = arith.constant 1 : index
    %c0_84 = arith.constant 0 : index
    %c0_85 = arith.constant 0 : index
    %187 = vector.load %arg5[%c1_83, %c0_84, %c0_85] : memref<2x1x96xf32, #tpu.memory_space<vmem>>, vector<1x1x96xf32>
    %188 = vector.shape_cast %187 : vector<1x1x96xf32> to vector<1x96xf32>
    %189 = vector.broadcast %188 : vector<1x96xf32> to vector<16x96xf32>
    %190 = arith.addf %186, %189 : vector<16x96xf32>
    %191 = vector.extract_strided_slice %190 {offsets = [0, 0], sizes = [16, 32], strides = [1, 1]} : vector<16x96xf32> to vector<16x32xf32>
    %192 = vector.extract_strided_slice %190 {offsets = [0, 32], sizes = [16, 32], strides = [1, 1]} : vector<16x96xf32> to vector<16x32xf32>
    %193 = vector.extract_strided_slice %190 {offsets = [0, 64], sizes = [16, 32], strides = [1, 1]} : vector<16x96xf32> to vector<16x32xf32>
    %194 = vector.extract_strided_slice %191 {offsets = [0, 0], sizes = [16, 8], strides = [1, 1]} : vector<16x32xf32> to vector<16x8xf32>
    %195 = vector.extract_strided_slice %192 {offsets = [0, 0], sizes = [16, 8], strides = [1, 1]} : vector<16x32xf32> to vector<16x8xf32>
    %196 = vector.extract_strided_slice %193 {offsets = [0, 0], sizes = [16, 8], strides = [1, 1]} : vector<16x32xf32> to vector<16x8xf32>
    %cst_86 = arith.constant dense<0.000000e+00> : vector<16x16xf32>
    %197 = tpu.matmul %194, %195, %cst_86 {dimension_numbers = #tpu.dot_dimension_numbers<[1], [1], [0], [0], [0, 0, 1, 0], [], []>} : vector<16x8xf32>, vector<16x8xf32>, vector<16x16xf32> -> vector<16x16xf32>
    %198 = arith.addf %197, %25 : vector<16x16xf32>
    %cst_87 = arith.constant dense<0xFF800000> : vector<16xf32>
    %199 = vector.multi_reduction <maximumf>, %198, %cst_87 [1] : vector<16x16xf32> to vector<16xf32>
    %200 = vector.shape_cast %199 : vector<16xf32> to vector<16x1xf32>
    %201 = vector.broadcast %200 : vector<16x1xf32> to vector<16x16xf32>
    %202 = arith.subf %198, %201 : vector<16x16xf32>
    %203 = math.exp %202 : vector<16x16xf32>
    %cst_88 = arith.constant dense<0.000000e+00> : vector<16xf32>
    %204 = vector.multi_reduction <add>, %203, %cst_88 [1] : vector<16x16xf32> to vector<16xf32>
    %205 = vector.shape_cast %204 : vector<16xf32> to vector<16x1xf32>
    %206 = tpu.reciprocal %205 {approx = true} : vector<16x1xf32> -> vector<16x1xf32>
    %207 = vector.broadcast %206 : vector<16x1xf32> to vector<16x16xf32>
    %208 = arith.mulf %203, %207 : vector<16x16xf32>
    %cst_89 = arith.constant dense<0.000000e+00> : vector<16x8xf32>
    %209 = tpu.matmul %208, %196, %cst_89 {dimension_numbers = #tpu.dot_dimension_numbers<[1], [0], [0], [1], [0, 0, 1, 1], [], []>} : vector<16x16xf32>, vector<16x8xf32>, vector<16x8xf32> -> vector<16x8xf32>
    %210 = vector.extract_strided_slice %191 {offsets = [0, 8], sizes = [16, 8], strides = [1, 1]} : vector<16x32xf32> to vector<16x8xf32>
    %211 = vector.extract_strided_slice %192 {offsets = [0, 8], sizes = [16, 8], strides = [1, 1]} : vector<16x32xf32> to vector<16x8xf32>
    %212 = vector.extract_strided_slice %193 {offsets = [0, 8], sizes = [16, 8], strides = [1, 1]} : vector<16x32xf32> to vector<16x8xf32>
    %cst_90 = arith.constant dense<0.000000e+00> : vector<16x16xf32>
    %213 = tpu.matmul %210, %211, %cst_90 {dimension_numbers = #tpu.dot_dimension_numbers<[1], [1], [0], [0], [0, 0, 1, 0], [], []>} : vector<16x8xf32>, vector<16x8xf32>, vector<16x16xf32> -> vector<16x16xf32>
    %214 = arith.addf %213, %25 : vector<16x16xf32>
    %cst_91 = arith.constant dense<0xFF800000> : vector<16xf32>
    %215 = vector.multi_reduction <maximumf>, %214, %cst_91 [1] : vector<16x16xf32> to vector<16xf32>
    %216 = vector.shape_cast %215 : vector<16xf32> to vector<16x1xf32>
    %217 = vector.broadcast %216 : vector<16x1xf32> to vector<16x16xf32>
    %218 = arith.subf %214, %217 : vector<16x16xf32>
    %219 = math.exp %218 : vector<16x16xf32>
    %cst_92 = arith.constant dense<0.000000e+00> : vector<16xf32>
    %220 = vector.multi_reduction <add>, %219, %cst_92 [1] : vector<16x16xf32> to vector<16xf32>
    %221 = vector.shape_cast %220 : vector<16xf32> to vector<16x1xf32>
    %222 = tpu.reciprocal %221 {approx = true} : vector<16x1xf32> -> vector<16x1xf32>
    %223 = vector.broadcast %222 : vector<16x1xf32> to vector<16x16xf32>
    %224 = arith.mulf %219, %223 : vector<16x16xf32>
    %cst_93 = arith.constant dense<0.000000e+00> : vector<16x8xf32>
    %225 = tpu.matmul %224, %212, %cst_93 {dimension_numbers = #tpu.dot_dimension_numbers<[1], [0], [0], [1], [0, 0, 1, 1], [], []>} : vector<16x16xf32>, vector<16x8xf32>, vector<16x8xf32> -> vector<16x8xf32>
    %226 = vector.extract_strided_slice %191 {offsets = [0, 16], sizes = [16, 8], strides = [1, 1]} : vector<16x32xf32> to vector<16x8xf32>
    %227 = vector.extract_strided_slice %192 {offsets = [0, 16], sizes = [16, 8], strides = [1, 1]} : vector<16x32xf32> to vector<16x8xf32>
    %228 = vector.extract_strided_slice %193 {offsets = [0, 16], sizes = [16, 8], strides = [1, 1]} : vector<16x32xf32> to vector<16x8xf32>
    %cst_94 = arith.constant dense<0.000000e+00> : vector<16x16xf32>
    %229 = tpu.matmul %226, %227, %cst_94 {dimension_numbers = #tpu.dot_dimension_numbers<[1], [1], [0], [0], [0, 0, 1, 0], [], []>} : vector<16x8xf32>, vector<16x8xf32>, vector<16x16xf32> -> vector<16x16xf32>
    %230 = arith.addf %229, %25 : vector<16x16xf32>
    %cst_95 = arith.constant dense<0xFF800000> : vector<16xf32>
    %231 = vector.multi_reduction <maximumf>, %230, %cst_95 [1] : vector<16x16xf32> to vector<16xf32>
    %232 = vector.shape_cast %231 : vector<16xf32> to vector<16x1xf32>
    %233 = vector.broadcast %232 : vector<16x1xf32> to vector<16x16xf32>
    %234 = arith.subf %230, %233 : vector<16x16xf32>
    %235 = math.exp %234 : vector<16x16xf32>
    %cst_96 = arith.constant dense<0.000000e+00> : vector<16xf32>
    %236 = vector.multi_reduction <add>, %235, %cst_96 [1] : vector<16x16xf32> to vector<16xf32>
    %237 = vector.shape_cast %236 : vector<16xf32> to vector<16x1xf32>
    %238 = tpu.reciprocal %237 {approx = true} : vector<16x1xf32> -> vector<16x1xf32>
    %239 = vector.broadcast %238 : vector<16x1xf32> to vector<16x16xf32>
    %240 = arith.mulf %235, %239 : vector<16x16xf32>
    %cst_97 = arith.constant dense<0.000000e+00> : vector<16x8xf32>
    %241 = tpu.matmul %240, %228, %cst_97 {dimension_numbers = #tpu.dot_dimension_numbers<[1], [0], [0], [1], [0, 0, 1, 1], [], []>} : vector<16x16xf32>, vector<16x8xf32>, vector<16x8xf32> -> vector<16x8xf32>
    %242 = vector.extract_strided_slice %191 {offsets = [0, 24], sizes = [16, 8], strides = [1, 1]} : vector<16x32xf32> to vector<16x8xf32>
    %243 = vector.extract_strided_slice %192 {offsets = [0, 24], sizes = [16, 8], strides = [1, 1]} : vector<16x32xf32> to vector<16x8xf32>
    %244 = vector.extract_strided_slice %193 {offsets = [0, 24], sizes = [16, 8], strides = [1, 1]} : vector<16x32xf32> to vector<16x8xf32>
    %cst_98 = arith.constant dense<0.000000e+00> : vector<16x16xf32>
    %245 = tpu.matmul %242, %243, %cst_98 {dimension_numbers = #tpu.dot_dimension_numbers<[1], [1], [0], [0], [0, 0, 1, 0], [], []>} : vector<16x8xf32>, vector<16x8xf32>, vector<16x16xf32> -> vector<16x16xf32>
    %246 = arith.addf %245, %25 : vector<16x16xf32>
    %cst_99 = arith.constant dense<0xFF800000> : vector<16xf32>
    %247 = vector.multi_reduction <maximumf>, %246, %cst_99 [1] : vector<16x16xf32> to vector<16xf32>
    %248 = vector.shape_cast %247 : vector<16xf32> to vector<16x1xf32>
    %249 = vector.broadcast %248 : vector<16x1xf32> to vector<16x16xf32>
    %250 = arith.subf %246, %249 : vector<16x16xf32>
    %251 = math.exp %250 : vector<16x16xf32>
    %cst_100 = arith.constant dense<0.000000e+00> : vector<16xf32>
    %252 = vector.multi_reduction <add>, %251, %cst_100 [1] : vector<16x16xf32> to vector<16xf32>
    %253 = vector.shape_cast %252 : vector<16xf32> to vector<16x1xf32>
    %254 = tpu.reciprocal %253 {approx = true} : vector<16x1xf32> -> vector<16x1xf32>
    %255 = vector.broadcast %254 : vector<16x1xf32> to vector<16x16xf32>
    %256 = arith.mulf %251, %255 : vector<16x16xf32>
    %cst_101 = arith.constant dense<0.000000e+00> : vector<16x8xf32>
    %257 = tpu.matmul %256, %244, %cst_101 {dimension_numbers = #tpu.dot_dimension_numbers<[1], [0], [0], [1], [0, 0, 1, 1], [], []>} : vector<16x16xf32>, vector<16x8xf32>, vector<16x8xf32> -> vector<16x8xf32>
    %258 = tpu.concatenate %209, %225, %241, %257 in 1 : vector<16x8xf32>, vector<16x8xf32>, vector<16x8xf32>, vector<16x8xf32> -> vector<16x32xf32>
    %c1_102 = arith.constant 1 : index
    %c0_103 = arith.constant 0 : index
    %c0_104 = arith.constant 0 : index
    %259 = vector.load %arg6[%c1_102, %c0_103, %c0_104] : memref<2x32x32xf32, #tpu.memory_space<vmem>>, vector<1x32x32xf32>
    %260 = vector.shape_cast %259 : vector<1x32x32xf32> to vector<32x32xf32>
    %cst_105 = arith.constant dense<0.000000e+00> : vector<16x32xf32>
    %261 = tpu.matmul %258, %260, %cst_105 {dimension_numbers = #tpu.dot_dimension_numbers<[1], [0], [0], [1], [0, 0, 1, 1], [], []>} : vector<16x32xf32>, vector<32x32xf32>, vector<16x32xf32> -> vector<16x32xf32>
    %c1_106 = arith.constant 1 : index
    %c0_107 = arith.constant 0 : index
    %c0_108 = arith.constant 0 : index
    %262 = vector.load %arg7[%c1_106, %c0_107, %c0_108] : memref<2x1x32xf32, #tpu.memory_space<vmem>>, vector<1x1x32xf32>
    %263 = vector.shape_cast %262 : vector<1x1x32xf32> to vector<1x32xf32>
    %264 = vector.broadcast %263 : vector<1x32xf32> to vector<16x32xf32>
    %265 = arith.addf %261, %264 : vector<16x32xf32>
    %266 = arith.addf %265, %183 : vector<16x32xf32>
    %c1_109 = arith.constant 1 : index
    %c0_110 = arith.constant 0 : index
    %c0_111 = arith.constant 0 : index
    %267 = vector.load %arg8[%c1_109, %c0_110, %c0_111] : memref<2x1x32xf32, #tpu.memory_space<vmem>>, vector<1x1x32xf32>
    %268 = vector.shape_cast %267 : vector<1x1x32xf32> to vector<1x32xf32>
    %c1_112 = arith.constant 1 : index
    %c0_113 = arith.constant 0 : index
    %c0_114 = arith.constant 0 : index
    %269 = vector.load %arg9[%c1_112, %c0_113, %c0_114] : memref<2x1x32xf32, #tpu.memory_space<vmem>>, vector<1x1x32xf32>
    %270 = vector.shape_cast %269 : vector<1x1x32xf32> to vector<1x32xf32>
    %cst_115 = arith.constant dense<0.000000e+00> : vector<16xf32>
    %271 = vector.multi_reduction <add>, %266, %cst_115 [1] : vector<16x32xf32> to vector<16xf32>
    %272 = vector.shape_cast %271 : vector<16xf32> to vector<16x1xf32>
    %273 = arith.mulf %266, %266 : vector<16x32xf32>
    %cst_116 = arith.constant dense<0.000000e+00> : vector<16xf32>
    %274 = vector.multi_reduction <add>, %273, %cst_116 [1] : vector<16x32xf32> to vector<16xf32>
    %275 = vector.shape_cast %274 : vector<16xf32> to vector<16x1xf32>
    %cst_117 = arith.constant 3.125000e-02 : f32
    %276 = vector.broadcast %cst_117 : f32 to vector<16x1xf32>
    %277 = arith.mulf %272, %276 : vector<16x1xf32>
    %cst_118 = arith.constant 3.125000e-02 : f32
    %278 = vector.broadcast %cst_118 : f32 to vector<16x1xf32>
    %279 = arith.mulf %275, %278 : vector<16x1xf32>
    %280 = arith.mulf %277, %277 : vector<16x1xf32>
    %281 = arith.subf %279, %280 : vector<16x1xf32>
    %282 = vector.broadcast %277 : vector<16x1xf32> to vector<16x32xf32>
    %283 = arith.subf %266, %282 : vector<16x32xf32>
    %cst_119 = arith.constant 9.99999996E-13 : f32
    %284 = vector.broadcast %cst_119 : f32 to vector<16x1xf32>
    %285 = arith.addf %281, %284 : vector<16x1xf32>
    %286 = math.rsqrt %285 : vector<16x1xf32>
    %287 = vector.broadcast %286 : vector<16x1xf32> to vector<16x32xf32>
    %288 = arith.mulf %283, %287 : vector<16x32xf32>
    %289 = vector.broadcast %268 : vector<1x32xf32> to vector<16x32xf32>
    %290 = arith.mulf %288, %289 : vector<16x32xf32>
    %291 = vector.broadcast %270 : vector<1x32xf32> to vector<16x32xf32>
    %292 = arith.addf %290, %291 : vector<16x32xf32>
    %c1_120 = arith.constant 1 : index
    %c0_121 = arith.constant 0 : index
    %c0_122 = arith.constant 0 : index
    %293 = vector.load %arg10[%c1_120, %c0_121, %c0_122] : memref<2x32x64xf32, #tpu.memory_space<vmem>>, vector<1x32x64xf32>
    %294 = vector.shape_cast %293 : vector<1x32x64xf32> to vector<32x64xf32>
    %cst_123 = arith.constant dense<0.000000e+00> : vector<16x64xf32>
    %295 = tpu.matmul %292, %294, %cst_123 {dimension_numbers = #tpu.dot_dimension_numbers<[1], [0], [0], [1], [0, 0, 1, 1], [], []>} : vector<16x32xf32>, vector<32x64xf32>, vector<16x64xf32> -> vector<16x64xf32>
    %c1_124 = arith.constant 1 : index
    %c0_125 = arith.constant 0 : index
    %c0_126 = arith.constant 0 : index
    %296 = vector.load %arg11[%c1_124, %c0_125, %c0_126] : memref<2x1x64xf32, #tpu.memory_space<vmem>>, vector<1x1x64xf32>
    %297 = vector.shape_cast %296 : vector<1x1x64xf32> to vector<1x64xf32>
    %298 = vector.broadcast %297 : vector<1x64xf32> to vector<16x64xf32>
    %299 = arith.addf %295, %298 : vector<16x64xf32>
    %cst_127 = arith.constant 5.000000e-01 : f32
    %300 = vector.broadcast %cst_127 : f32 to vector<16x64xf32>
    %301 = arith.mulf %300, %299 : vector<16x64xf32>
    %cst_128 = arith.constant 0.707106769 : f32
    %302 = vector.broadcast %cst_128 : f32 to vector<16x64xf32>
    %303 = arith.mulf %299, %302 : vector<16x64xf32>
    %304 = math.erf %303 : vector<16x64xf32>
    %cst_129 = arith.constant 1.000000e+00 : f32
    %305 = vector.broadcast %cst_129 : f32 to vector<16x64xf32>
    %306 = arith.addf %305, %304 : vector<16x64xf32>
    %307 = arith.mulf %301, %306 : vector<16x64xf32>
    %c1_130 = arith.constant 1 : index
    %c0_131 = arith.constant 0 : index
    %c0_132 = arith.constant 0 : index
    %308 = vector.load %arg12[%c1_130, %c0_131, %c0_132] : memref<2x64x32xf32, #tpu.memory_space<vmem>>, vector<1x64x32xf32>
    %309 = vector.shape_cast %308 : vector<1x64x32xf32> to vector<64x32xf32>
    %cst_133 = arith.constant dense<0.000000e+00> : vector<16x32xf32>
    %310 = tpu.matmul %307, %309, %cst_133 {dimension_numbers = #tpu.dot_dimension_numbers<[1], [0], [0], [1], [0, 0, 1, 1], [], []>} : vector<16x64xf32>, vector<64x32xf32>, vector<16x32xf32> -> vector<16x32xf32>
    %c1_134 = arith.constant 1 : index
    %c0_135 = arith.constant 0 : index
    %c0_136 = arith.constant 0 : index
    %311 = vector.load %arg13[%c1_134, %c0_135, %c0_136] : memref<2x1x32xf32, #tpu.memory_space<vmem>>, vector<1x1x32xf32>
    %312 = vector.shape_cast %311 : vector<1x1x32xf32> to vector<1x32xf32>
    %313 = vector.broadcast %312 : vector<1x32xf32> to vector<16x32xf32>
    %314 = arith.addf %310, %313 : vector<16x32xf32>
    %315 = arith.addf %314, %292 : vector<16x32xf32>
    %c1_137 = arith.constant 1 : index
    %c0_138 = arith.constant 0 : index
    %c0_139 = arith.constant 0 : index
    %316 = vector.load %arg14[%c1_137, %c0_138, %c0_139] : memref<2x1x32xf32, #tpu.memory_space<vmem>>, vector<1x1x32xf32>
    %317 = vector.shape_cast %316 : vector<1x1x32xf32> to vector<1x32xf32>
    %c1_140 = arith.constant 1 : index
    %c0_141 = arith.constant 0 : index
    %c0_142 = arith.constant 0 : index
    %318 = vector.load %arg15[%c1_140, %c0_141, %c0_142] : memref<2x1x32xf32, #tpu.memory_space<vmem>>, vector<1x1x32xf32>
    %319 = vector.shape_cast %318 : vector<1x1x32xf32> to vector<1x32xf32>
    %cst_143 = arith.constant dense<0.000000e+00> : vector<16xf32>
    %320 = vector.multi_reduction <add>, %315, %cst_143 [1] : vector<16x32xf32> to vector<16xf32>
    %321 = vector.shape_cast %320 : vector<16xf32> to vector<16x1xf32>
    %322 = arith.mulf %315, %315 : vector<16x32xf32>
    %cst_144 = arith.constant dense<0.000000e+00> : vector<16xf32>
    %323 = vector.multi_reduction <add>, %322, %cst_144 [1] : vector<16x32xf32> to vector<16xf32>
    %324 = vector.shape_cast %323 : vector<16xf32> to vector<16x1xf32>
    %cst_145 = arith.constant 3.125000e-02 : f32
    %325 = vector.broadcast %cst_145 : f32 to vector<16x1xf32>
    %326 = arith.mulf %321, %325 : vector<16x1xf32>
    %cst_146 = arith.constant 3.125000e-02 : f32
    %327 = vector.broadcast %cst_146 : f32 to vector<16x1xf32>
    %328 = arith.mulf %324, %327 : vector<16x1xf32>
    %329 = arith.mulf %326, %326 : vector<16x1xf32>
    %330 = arith.subf %328, %329 : vector<16x1xf32>
    %331 = vector.broadcast %326 : vector<16x1xf32> to vector<16x32xf32>
    %332 = arith.subf %315, %331 : vector<16x32xf32>
    %cst_147 = arith.constant 9.99999996E-13 : f32
    %333 = vector.broadcast %cst_147 : f32 to vector<16x1xf32>
    %334 = arith.addf %330, %333 : vector<16x1xf32>
    %335 = math.rsqrt %334 : vector<16x1xf32>
    %336 = vector.broadcast %335 : vector<16x1xf32> to vector<16x32xf32>
    %337 = arith.mulf %332, %336 : vector<16x32xf32>
    %338 = vector.broadcast %317 : vector<1x32xf32> to vector<16x32xf32>
    %339 = arith.mulf %337, %338 : vector<16x32xf32>
    %340 = vector.broadcast %319 : vector<1x32xf32> to vector<16x32xf32>
    %341 = arith.addf %339, %340 : vector<16x32xf32>
    %342 = vector.extract_strided_slice %341 {offsets = [0, 0], sizes = [1, 32], strides = [1, 1]} : vector<16x32xf32> to vector<1x32xf32>
    %343 = vector.extract_strided_slice %341 {offsets = [8, 0], sizes = [1, 32], strides = [1, 1]} : vector<16x32xf32> to vector<1x32xf32>
    %344 = tpu.concatenate %342, %343 in 0 : vector<1x32xf32>, vector<1x32xf32> -> vector<2x32xf32>
    %c0_148 = arith.constant 0 : index
    %c0_149 = arith.constant 0 : index
    %345 = vector.load %arg16[%c0_148, %c0_149] : memref<32x32xf32, #tpu.memory_space<vmem>>, vector<32x32xf32>
    %cst_150 = arith.constant dense<0.000000e+00> : vector<2x32xf32>
    %346 = tpu.matmul %344, %345, %cst_150 {dimension_numbers = #tpu.dot_dimension_numbers<[1], [0], [0], [1], [0, 0, 1, 1], [], []>} : vector<2x32xf32>, vector<32x32xf32>, vector<2x32xf32> -> vector<2x32xf32>
    %c0_151 = arith.constant 0 : index
    %c0_152 = arith.constant 0 : index
    %347 = vector.load %arg17[%c0_151, %c0_152] : memref<1x32xf32, #tpu.memory_space<vmem>>, vector<1x32xf32>
    %348 = vector.broadcast %347 : vector<1x32xf32> to vector<2x32xf32>
    %349 = arith.addf %346, %348 : vector<2x32xf32>
    %350 = math.tanh %349 : vector<2x32xf32>
    %c0_153 = arith.constant 0 : index
    %c0_154 = arith.constant 0 : index
    %351 = vector.load %arg18[%c0_153, %c0_154] : memref<32x128xf32, #tpu.memory_space<vmem>>, vector<32x128xf32>
    %cst_155 = arith.constant dense<0.000000e+00> : vector<2x128xf32>
    %352 = tpu.matmul %350, %351, %cst_155 {dimension_numbers = #tpu.dot_dimension_numbers<[1], [0], [0], [1], [0, 0, 1, 1], [], []>} : vector<2x32xf32>, vector<32x128xf32>, vector<2x128xf32> -> vector<2x128xf32>
    %c0_156 = arith.constant 0 : index
    %c0_157 = arith.constant 0 : index
    %353 = vector.load %arg19[%c0_156, %c0_157] : memref<1x128xf32, #tpu.memory_space<vmem>>, vector<1x128xf32>
    %354 = vector.broadcast %353 : vector<1x128xf32> to vector<2x128xf32>
    %355 = arith.addf %352, %354 : vector<2x128xf32>
    %c0_158 = arith.constant 0 : index
    %c0_159 = arith.constant 0 : index
    %356 = vector.load %arg20[%c0_158, %c0_159] : memref<2x128xf32, #tpu.memory_space<vmem>>, vector<2x128xf32>
    tpu.vector_store %arg20[%c0_158, %c0_159], %355 {strides = array<i32>} : memref<2x128xf32, #tpu.memory_space<vmem>>, vector<2x128xf32>,
    return
  }
}

</mosaic_0001>

<bundles_post_ra>
// kernel: bert_for_sequence_classification.1
= control target key start
LH: loop header
LB: loop body
LE: loop exit
PB: predicated region body
PF: predicated region fallthrough
CT: control target
= control target key end

     0   :  { %s4471_s0 = inlined_call_operand.vmem [shape: f32[16,32], index: 0, kind: input, shape index: {}]   ;;  %s4472_s1 = inlined_call_operand.vmem [shape: f32[16,16], index: 1, kind: input, shape index: {}]   ;;  %s4473_s2 = inlined_call_operand.vmem [shape: f32[1,32], index: 2, kind: input, shape index: {}]   ;;  %s4474_s3 = inlined_call_operand.vmem [shape: f32[1,32], index: 3, kind: input, shape index: {}]   ;;  %s4475_s4 = inlined_call_operand.vmem [shape: f32[2,32,96], index: 4, kind: input, shape index: {}]   ;;  %s4476_s5 = inlined_call_operand.vmem [shape: f32[2,1,96], index: 5, kind: input, shape index: {}]   ;;  %s4477_s6 = inlined_call_operand.vmem [shape: f32[2,32,32], index: 6, kind: input, shape index: {}]   ;;  %s4478_s7 = inlined_call_operand.vmem [shape: f32[2,1,32], index: 7, kind: input, shape index: {}]   ;;  %s4479_s8 = inlined_call_operand.vmem [shape: f32[2,1,32], index: 8, kind: input, shape index: {}]   ;;  %s4480_s9 = inlined_call_operand.vmem [shape: f32[2,1,32], index: 9, kind: input, shape index: {}]   ;;  %s4481_s10 = inlined_call_operand.vmem [shape: f32[2,32,64], index: 10, kind: input, shape index: {}]   ;;  %s4482_s11 = inlined_call_operand.vmem [shape: f32[2,1,64], index: 11, kind: input, shape index: {}]   ;;  %s4483_s12 = inlined_call_operand.vmem [shape: f32[2,64,32], index: 12, kind: input, shape index: {}]   ;;  %s4484_s13 = inlined_call_operand.vmem [shape: f32[2,1,32], index: 13, kind: input, shape index: {}]   ;;  %s4485_s14 = inlined_call_operand.vmem [shape: f32[2,1,32], index: 14, kind: input, shape index: {}]   ;;  %s4486_s15 = inlined_call_operand.vmem [shape: f32[2,1,32], index: 15, kind: input, shape index: {}]   ;;  %s4487_s16 = inlined_call_operand.vmem [shape: f32[32,32], index: 16, kind: input, shape index: {}]   ;;  %s4488_s17 = inlined_call_operand.vmem [shape: f32[1,32], index: 17, kind: input, shape index: {}]   ;;  %s4489_s18 = inlined_call_operand.vmem [shape: f32[32,128], index: 18, kind: input, shape index: {}]   ;;  %s4490_s19 = inlined_call_operand.vmem [shape: f32[1,128], index: 19, kind: input, shape index: {}]   ;;  %s4491_s20 = inlined_call_operand.hbm [shape: f32[2,128], index: 20, kind: output, shape index: {}]  }
   0x1   :  { %4509 = sst [smem:[#allocation5_spill]] %s4471_s0 }
   0x2   :  { %4510 = sst [smem:[#allocation6_spill]] %s4472_s1 }
   0x3   :  { %4511 = sst [smem:[#allocation7_spill]] %s4473_s2 }
   0x4   :  { %4512 = sst [smem:[#allocation8_spill]] %s4474_s3 }
   0x5   :  { %4513 = sst [smem:[#allocation9_spill]] %s4475_s4 }
   0x6   :  { %s4514_s23 = sld [smem:[#allocation5_spill]]  ;;  %vm70_vm0 = vcmask 261120  }
   0xc   :  { %v66_v0 = vld [vmem:[%s4514_s23] sm:$0xff]  ;;  %v67_v1 = vld [vmem:[%s4514_s23 + $0x8] sm:$0xff] }
   0xd   :  { %25 = vsyncpa [#allocation3], 0  ;;  %v71_v2 = vsel %vm70_vm0, %v66_v0, 0.0  ;;  %v77_v3 = vmul.f32 %v66_v0, %v66_v0  ;;  %v78_v4 = vmul.f32 %v67_v1, %v67_v1  ;;  %v74_v6 = vsel %vm70_vm0, %v67_v1, 0.0  ;;  %s4515_s26 = sld [smem:[#allocation9_spill]]  ;;  %s4516_s22 = sld [smem:[#allocation7_spill]] }
   0xe   :  { %72 = vadd.xlane.f32.xlu0 %v71_v2  ;;  %s4517_s2 = sld [smem:[#allocation8_spill]]  ;;  %v2946_v40 = vld [vmem:[%s4476_s5] ss:$0 sm:$0xff]  ;;  %vm217_vm1 = vcmask 64512   ;;  %s3816_s27 = smov 88   ;;  %vm301_vm3 = vcmask 130048  }
   0xf   :  { %v79_v5 = vsel %vm70_vm0, %v77_v3, 0.0  ;;  %v82_v7 = vsel %vm70_vm0, %v78_v4, 0.0  ;;  %s3817_s28 = smov 96   ;;  %s3818_s4 = smov 120   ;;  %vm3998_vm2 = vmpackc.low %vm217_vm1, %vm217_vm1  ;;  %vm1039_vm4 = vcmask 195584   ;;  %vm1301_vm5 = vcmask 523264  }
  0x10   :  { %80 = vadd.xlane.f32.xlu1 %v79_v5  ;;  %s4520_s0 = sld [smem:[#allocation6_spill]]  ;;  %s3820_s23 = smov 64   ;;  %vm3831_vm6 = vmmov 0   ;;  %vm2758_vm7 = vcmask 1040384  }
  0x11   :  { %s4506_s24 = smov 80   ;;  %s4503_s25 = smov 48  }
  0x12   :  { %75 = vadd.xlane.f32.xlu0 %v74_v6  ;;  %s4499_s3 = smov 104   ;;  %s4498_s29 = smov 72  }
  0x13   :  { %v119_v8 = vld [vmem:[%s4515_s26] sm:$0xff]  ;;  %v120_v9 = vld [vmem:[%s4515_s26 + $0x8] sm:$0xff]  ;;  %v121_v10 = vld [vmem:[%s4515_s26 + $0x10] sm:$0xff]  ;;  %s4497_s30 = smov 40   ;;  %s4501_s21 = smov 8  }
  0x14   :  { %83 = vadd.xlane.f32.xlu1 %v82_v7  ;;  %v3426_v11 = vpack.c.bf16 %v120_v9, %v119_v8  ;;  %v122_v12 = vld [vmem:[%s4515_s26 + $0x18] sm:$0xff]  ;;  %v2944_v30 = vld [vmem:[%s4516_s22] ss:$0 sm:$0xff]  ;;  %s3819_s22 = smov 56   ;;  %s4495_s1 = smov 16  }
  0x15   :  { %v3430_v13 = vpack.c.bf16 %v122_v12, %v121_v10  ;;  %v2945_v32 = vld [vmem:[%s4517_s2] ss:$0 sm:$0xff]  ;;  %s4504_s2 = smov 112  }
  0x16   :  { %3427 = vmatprep.subr.bf16.mxu0 %v3426_v11  ;;  %v4017_v57 = vld [vmem:[%s4520_s0 + $0x8] sm:$0xff]  ;;  %v4022_v58 = vld [vmem:[%s4520_s0] sm:$0xff] }
  0x17   :  { %3429 = vmatpush3.bf16.msra.mxu0 %v3426_v11 }
  0x18   :  { %3431 = vmatprep.subr.bf16.mxu0 %v3430_v13 }
  0x1b   :  { %3433 = vmatpush3.bf16.msra.mxu0 %v3430_v13 }
  0x9b   :  { %v73_v14 = vpop.xlane.xlu0 %72 }
  0x9c   :  { %v85_v15 = vmul.f32 0.03125, %v73_v14 }
  0x9d   :  { %v81_v16 = vpop.xlane.xlu1 %80 }
  0x9e   :  { %v89_v17 = vmul.f32 %v85_v15, %v85_v15  ;;  %v87_v18 = vmul.f32 0.03125, %v81_v16  ;;  %v93_v28 = vsub.f32 %v66_v0, %v85_v15 }
  0x9f   :  { %v76_v19 = vpop.xlane.xlu0 %75 }
  0xa0   :  { %v91_v20 = vsub.f32 %v87_v18, %v89_v17  ;;  %v86_v21 = vmul.f32 0.03125, %v76_v19 }
  0xa1   :  { %v84_v22 = vpop.xlane.xlu1 %83 }
  0xa2   :  { %v95_v23 = vadd.f32 1e-12, %v91_v20  ;;  %v90_v24 = vmul.f32 %v86_v21, %v86_v21  ;;  %v88_v25 = vmul.f32 0.03125, %v84_v22  ;;  %v94_v33 = vsub.f32 %v67_v1, %v86_v21 }
  0xa4   :  { %3696 = vrsqrt.f32 %v95_v23  ;;  %v92_v26 = vsub.f32 %v88_v25, %v90_v24 }
  0xa6   :  { %v96_v27 = vadd.f32 1e-12, %v92_v26 }
  0xa8   :  { %3698 = vrsqrt.f32 %v96_v27 }
  0xae   :  { %v3697_v29 = vpop.eup %3696 }
  0xaf   :  { %v99_v31 = vmul.f32 %v3697_v29, %v93_v28 }
  0xb1   :  { %v107_v34 = vmul.f32 %v2944_v30, %v99_v31 }
  0xb2   :  { %v3699_v35 = vpop.eup %3698 }
  0xb3   :  { %v100_v36 = vmul.f32 %v3699_v35, %v94_v33  ;;  %v3967_v37 = vadd.f32 %v2945_v32, %v107_v34 }
  0xb5   :  { %v108_v38 = vmul.f32 %v2944_v30, %v100_v36  ;;  %3196 = vmatprep.mubr.msk.f32.mxu0 %vm70_vm0, %v3967_v37 }
  0xb7   :  { %v3971_v39 = vadd.f32 %v2945_v32, %v108_v38 }
  0xb9   :  { %3197 = vmatmul.mubr.msk.f32.vlgmr.msra.gmra.mrb[0].mxu0 %vm70_vm0, %v3971_v39 }
 0x18c   :  { %v3198_v41 = vpop.f32.mrb[0].mxu0 }
 0x18d   :  { %v3978_v42 = vadd.f32 %v3198_v41, %v2946_v40  ;;  %v202_v43 = vpop.f32.mrb[1].mxu0 }
 0x18e   :  { %v3980_v44 = vadd.f32 %v2946_v40, %v202_v43 }
 0x190   :  { %3203 = vmatprep.mubr.msk.f32.mxu1 %vm217_vm1, %v3980_v44  ;;  %v3986_v45 = vpack.i.bf16 %v3978_v42, %v3980_v44 }
 0x192   :  { %3622 = vrot.lane.b32.xlu1 %v3986_v45, %s3816_s27  ;;  %3617 = vrot.lane.b32.xlu0 %v3986_v45, %s3817_s28 }
 0x196   :  { %411 = vrot.lane.b32.xlu1 %v3980_v44, %s3818_s4 }
 0x19a   :  { %413 = vrot.lane.b32.xlu1 %v3978_v42, %s3818_s4 }
 0x204   :  { %v3623_v46 = vpop.permute.xlu1 %3622  ;;  %v3618_v47 = vpop.permute.xlu0 %3617 }
 0x205   :  { %v3625_v48 = vunpack.i.h.bf16 %v3623_v46  ;;  %v3624_v49 = vunpack.i.l.bf16 %v3623_v46  ;;  %v3620_v50 = vunpack.i.h.bf16 %v3618_v47  ;;  %v3619_v51 = vunpack.i.l.bf16 %v3618_v47 }
 0x207   :  { %v3434_v53 = vpack.c.bf16 %v3620_v50, %v3619_v51  ;;  %v3444_v54 = vpack.c.bf16 %v3625_v48, %v3624_v49 }
 0x208   :  { %v412_v55 = vpop.permute.xlu1 %411 }
 0x209   :  { %3436 = vmatprep.subr.msk.bf16.mxu1 %vm3998_vm2, %v3434_v53 }
 0x20a   :  { %3439 = vmatpush3.bf16.xpose.msk.msra.mxu1 %vm3998_vm2, %v3434_v53 }
 0x20b   :  { %3446 = vmatprep.subr.msk.bf16.mxu1 %vm3998_vm2, %v3444_v54 }
 0x20c   :  { %v414_v56 = vpop.permute.xlu1 %413 }
 0x211   :  { %3204 = vmatmul.mubr.msk.f32.vlgmr.msra.gmra.mrb[0].mxu1 %vm217_vm1, %v3978_v42 }
 0x212   :  { %3449 = vmatpush3.bf16.xpose.msk.msra.mxu1 %vm3998_vm2, %v3444_v54  ;;  %3217 = vmatprep.mubr.msk.f32.mxu1 %vm217_vm1, %v412_v55 }
 0x219   :  { %3218 = vmatmul.mubr.msk.f32.vlgmr.msra.gmra.mrb[2].mxu1 %vm217_vm1, %v414_v56 }
 0x2e4   :  { %v3205_v59 = vpop.f32.mrb[0].mxu1 }
 0x2e5   :  { %v298_v60 = vadd.f32 %v3205_v59, %v4017_v57  ;;  %v292_v61 = vpop.f32.mrb[1].mxu1 }
 0x2e6   :  { %v293_v62 = vadd.f32 %v292_v61, %v4022_v58 }
 0x2e7   :  { %v305_v63 = vsel %vm301_vm3, %v298_v60, -inf }
 0x2e8   :  { %306 = vmax.xlane.f32.xlu1 %v305_v63  ;;  %v302_v0 = vsel %vm301_vm3, %v293_v62, -inf }
 0x2e9   :  { %303 = vmax.xlane.f32.xlu0 %v302_v0 }
 0x2ec   :  { %v3219_v1 = vpop.f32.mrb[2].mxu1 }
 0x2ed   :  { %v493_v2 = vpop.f32.mrb[3].mxu1  ;;  %v499_v4 = vadd.f32 %v3219_v1, %v4017_v57 }
 0x2ee   :  { %v494_v3 = vadd.f32 %v493_v2, %v4022_v58 }
 0x2ef   :  { %v505_v6 = vsel %vm301_vm3, %v499_v4, -inf }
 0x2f0   :  { %v502_v5 = vsel %vm301_vm3, %v494_v3, -inf }
 0x2f1   :  { %503 = vmax.xlane.f32.xlu0 %v502_v5 }
 0x2f5   :  { %506 = vmax.xlane.f32.xlu0 %v505_v6 }
 0x375   :  { %v307_v7 = vpop.xlane.xlu1 %306 }
 0x376   :  { %v309_v8 = vsub.f32 %v298_v60, %v307_v7  ;;  %v304_v9 = vpop.xlane.xlu0 %303 }
 0x377   :  { %v308_v10 = vsub.f32 %v293_v62, %v304_v9 }
 0x378   :  { %v312_v11 = vmul.f32 1.442695, %v309_v8 }
 0x379   :  { %v310_v12 = vmul.f32 1.442695, %v308_v10 }
 0x37a   :  { %3700 = vpow2.f32 %v312_v11 }
 0x37b   :  { %3702 = vpow2.f32 %v310_v12 }
 0x37e   :  { %v504_v13 = vpop.xlane.xlu0 %503 }
 0x37f   :  { %v508_v14 = vsub.f32 %v494_v3, %v504_v13 }
 0x381   :  { %v510_v15 = vmul.f32 1.442695, %v508_v14 }
 0x382   :  { %v507_v16 = vpop.xlane.xlu0 %506 }
 0x383   :  { %3704 = vpow2.f32 %v510_v15  ;;  %v509_v17 = vsub.f32 %v499_v4, %v507_v16 }
 0x384   :  { %v3701_v18 = vpop.eup %3700 }
 0x385   :  { %v3703_v19 = vpop.eup %3702  ;;  %v512_v20 = vmul.f32 1.442695, %v509_v17  ;;  %v317_v21 = vsel %vm301_vm3, %v3701_v18, 0.0 }
 0x386   :  { %318 = vadd.xlane.f32.xlu1 %v317_v21  ;;  %v314_v22 = vsel %vm301_vm3, %v3703_v19, 0.0 }
 0x387   :  { %3706 = vpow2.f32 %v512_v20  ;;  %315 = vadd.xlane.f32.xlu0 %v314_v22 }
 0x38d   :  { %v3705_v23 = vpop.eup %3704 }
 0x38e   :  { %v514_v24 = vsel %vm301_vm3, %v3705_v23, 0.0 }
 0x38f   :  { %515 = vadd.xlane.f32.xlu0 %v514_v24 }
 0x391   :  { %v3707_v25 = vpop.eup %3706 }
 0x392   :  { %v517_v26 = vsel %vm301_vm3, %v3707_v25, 0.0 }
 0x393   :  { %518 = vadd.xlane.f32.xlu1 %v517_v26 }
 0x3a4   :  { %3632 = vrot.lane.b32.xlu1 %v3986_v45, %s3819_s22 }
 0x3a5   :  { %3627 = vrot.lane.b32.xlu0 %v3986_v45, %s3820_s23 }
 0x3a8   :  { %3637 = vrot.lane.b32.xlu1 %v3986_v45, %s4506_s24  ;;  %s4524_s24 = smov 104  }
 0x3a9   :  { %613 = vrot.lane.b32.xlu0 %v3978_v42, %s4504_s2 }
 0x3ac   :  { %611 = vrot.lane.b32.xlu1 %v3980_v44, %s4504_s2  ;;  %s4526_s2 = smov 40  }
 0x413   :  { %v319_v28 = vpop.xlane.xlu1 %318 }
 0x414   :  { %v316_v27 = vpop.xlane.xlu0 %315 }
 0x415   :  { %3708 = vrcp.f32 %v316_v27 }
 0x416   :  { %3710 = vrcp.f32 %v319_v28 }
 0x41c   :  { %v516_v29 = vpop.xlane.xlu0 %515 }
 0x41d   :  { %3712 = vrcp.f32 %v516_v29 }
 0x41f   :  { %v3709_v30 = vpop.eup %3708 }
 0x420   :  { %v519_v31 = vpop.xlane.xlu1 %518  ;;  %v3628_v32 = vpop.permute.xlu0 %3627  ;;  %v322_v33 = vmul.f32 %v3709_v30, %v3703_v19 }
 0x421   :  { %3714 = vrcp.f32 %v519_v31  ;;  %v3630_v34 = vunpack.i.h.bf16 %v3628_v32  ;;  %v3629_v35 = vunpack.i.l.bf16 %v3628_v32  ;;  %v3711_v38 = vpop.eup %3710 }
 0x422   :  { %3210 = vmatprep.mubr.msk.f32.mxu0 %vm301_vm3, %v322_v33  ;;  %v323_v47 = vmul.f32 %v3711_v38, %v3701_v18 }
 0x423   :  { %v3440_v36 = vpack.c.bf16 %v3630_v34, %v3629_v35 }
 0x424   :  { %v3633_v40 = vpop.permute.xlu1 %3632  ;;  %v614_v60 = vpop.permute.xlu0 %613 }
 0x425   :  { %v3635_v41 = vunpack.i.h.bf16 %v3633_v40  ;;  %v3634_v43 = vunpack.i.l.bf16 %v3633_v40  ;;  %3441 = vmatprep.subr.bf16.mxu0 %v3440_v36 }
 0x426   :  { %3443 = vmatpush3.bf16.msra.mxu0 %v3440_v36 }
 0x427   :  { %v3713_v46 = vpop.eup %3712  ;;  %v3450_v48 = vpack.c.bf16 %v3635_v41, %v3634_v43 }
 0x428   :  { %v3638_v49 = vpop.permute.xlu1 %3637  ;;  %v522_v50 = vmul.f32 %v3713_v46, %v3705_v23 }
 0x429   :  { %v3640_v51 = vunpack.i.h.bf16 %v3638_v49  ;;  %v3639_v53 = vunpack.i.l.bf16 %v3638_v49  ;;  %3211 = vmatmul.mubr.msk.f32.vlgmr.msra.gmra.mrb[2].mxu0 %vm301_vm3, %v323_v47  ;;  %3451 = vmatprep.subr.bf16.mxu0 %v3450_v48 }
 0x42a   :  { %3453 = vmatpush3.bf16.msra.mxu0 %v3450_v48  ;;  %3224 = vmatprep.mubr.msk.f32.mxu0 %vm301_vm3, %v522_v50 }
 0x42b   :  { %v3715_v54 = vpop.eup %3714  ;;  %v3454_v55 = vpack.c.bf16 %v3640_v51, %v3639_v53 }
 0x42c   :  { %v523_v56 = vmul.f32 %v3715_v54, %v3707_v25  ;;  %v612_v59 = vpop.permute.xlu1 %611 }
 0x42d   :  { %3456 = vmatprep.subr.msk.bf16.mxu0 %vm3998_vm2, %v3454_v55 }
 0x42e   :  { %3225 = vmatmul.mubr.msk.f32.vlgmr.msra.gmra.mrb[4].mxu0 %vm301_vm3, %v523_v56 }
 0x42f   :  { %3231 = vmatprep.mubr.msk.f32.mxu0 %vm217_vm1, %v612_v59 }
 0x433   :  { %3459 = vmatpush3.bf16.xpose.msk.msra.mxu0 %vm3998_vm2, %v3454_v55 }
 0x43a   :  { %3232 = vmatmul.mubr.msk.f32.vlgmr.msra.gmra.mrb[6].mxu0 %vm217_vm1, %v614_v60 }
 0x4fc   :  { %v4056_v61 = vpop.f32.mrb[2].mxu0 }
 0x4fd   :  { %v4058_v62 = vpop.f32.mrb[3].mxu0 }
 0x501   :  { %v4060_v63 = vpop.f32.mrb[4].mxu0 }
 0x502   :  { %v4062_v0 = vpop.f32.mrb[5].mxu0 }
 0x50d   :  { %v3233_v1 = vpop.f32.mrb[6].mxu0 }
 0x50e   :  { %v699_v2 = vadd.f32 %v3233_v1, %v4017_v57  ;;  %v693_v3 = vpop.f32.mrb[7].mxu0 }
 0x50f   :  { %v694_v4 = vadd.f32 %v693_v3, %v4022_v58 }
 0x510   :  { %v705_v5 = vsel %vm301_vm3, %v699_v2, -inf }
 0x511   :  { %706 = vmax.xlane.f32.xlu0 %v705_v5  ;;  %v702_v6 = vsel %vm301_vm3, %v694_v4, -inf  ;;  %v1042_v5 = vld [vmem:[%s4477_s6] sm:$0xff] }
 0x512   :  { %703 = vmax.xlane.f32.xlu1 %v702_v6  ;;  %v1044_v6 = vld [vmem:[%s4477_s6 + $0x10] sm:$0xff] }
 0x523   :  { %3642 = vrot.lane.b32.xlu1 %v3986_v45, %s4503_s25 }
 0x527   :  { %811 = vrot.lane.b32.xlu1 %v3980_v44, %s4499_s3 }
 0x52b   :  { %813 = vrot.lane.b32.xlu1 %v3978_v42, %s4499_s3 }
 0x59e   :  { %v707_v7 = vpop.xlane.xlu0 %706 }
 0x59f   :  { %v709_v8 = vsub.f32 %v699_v2, %v707_v7  ;;  %v704_v9 = vpop.xlane.xlu1 %703 }
 0x5a0   :  { %v708_v10 = vsub.f32 %v694_v4, %v704_v9 }
 0x5a1   :  { %v712_v11 = vmul.f32 1.442695, %v709_v8  ;;  %v1045_v8 = vld [vmem:[%s4477_s6 + $0x18] sm:$0xff] }
 0x5a2   :  { %v710_v12 = vmul.f32 1.442695, %v708_v10  ;;  %v3478_v9 = vpack.c.bf16 %v1045_v8, %v1044_v6  ;;  %v1286_v8 = vld [vmem:[%s4483_s12] sm:$0xff] }
 0x5a3   :  { %3716 = vpow2.f32 %v712_v11  ;;  %v3643_v13 = vpop.permute.xlu1 %3642 }
 0x5a4   :  { %v3645_v14 = vunpack.i.h.bf16 %v3643_v13  ;;  %v3644_v15 = vunpack.i.l.bf16 %v3643_v13  ;;  %3718 = vpow2.f32 %v710_v12 }
 0x5a6   :  { %v3460_v16 = vpack.c.bf16 %v3645_v14, %v3644_v15 }
 0x5a7   :  { %v812_v29 = vpop.permute.xlu1 %811 }
 0x5a8   :  { %3461 = vmatprep.subr.bf16.mxu1 %v3460_v16 }
 0x5a9   :  { %3463 = vmatpush3.bf16.msra.mxu1 %v3460_v16 }
 0x5ab   :  { %v814_v30 = vpop.permute.xlu1 %813 }
 0x5ad   :  { %v3717_v17 = vpop.eup %3716 }
 0x5ae   :  { %v717_v44 = vsel %vm301_vm3, %v3717_v17, 0.0  ;;  %v3719_v18 = vpop.eup %3718 }
 0x5af   :  { %718 = vadd.xlane.f32.xlu0 %v717_v44  ;;  %v714_v42 = vsel %vm301_vm3, %v3719_v18, 0.0 }
 0x5b3   :  { %715 = vadd.xlane.f32.xlu0 %v714_v42 }
 0x5c9   :  { %3647 = vrot.lane.b32.xlu0 %v3986_v45, %s4498_s29 }
 0x63c   :  { %v719_v19 = vpop.xlane.xlu0 %718 }
 0x63d   :  { %3720 = vrcp.f32 %v719_v19 }
 0x640   :  { %v716_v20 = vpop.xlane.xlu0 %715 }
 0x641   :  { %3722 = vrcp.f32 %v716_v20 }
 0x644   :  { %v3648_v21 = vpop.permute.xlu0 %3647 }
 0x645   :  { %v3650_v22 = vunpack.i.h.bf16 %v3648_v21  ;;  %v3649_v23 = vunpack.i.l.bf16 %v3648_v21 }
 0x647   :  { %v3464_v24 = vpack.c.bf16 %v3650_v22, %v3649_v23  ;;  %v3721_v25 = vpop.eup %3720 }
 0x648   :  { %v723_v28 = vmul.f32 %v3721_v25, %v3717_v17 }
 0x649   :  { %3466 = vmatprep.subr.msk.bf16.mxu1 %vm3998_vm2, %v3464_v24 }
 0x64b   :  { %v3723_v26 = vpop.eup %3722 }
 0x64c   :  { %v722_v27 = vmul.f32 %v3723_v26, %v3719_v18 }
 0x64e   :  { %3238 = vmatprep.mubr.msk.f32.mxu1 %vm301_vm3, %v722_v27 }
 0x64f   :  { %3239 = vmatmul.mubr.msk.f32.vlgmr.msra.gmra.mrb[4].mxu1 %vm301_vm3, %v723_v28 }
 0x650   :  { %3469 = vmatpush3.bf16.xpose.msk.msra.mxu1 %vm3998_vm2, %v3464_v24  ;;  %3245 = vmatprep.mubr.msk.f32.mxu1 %vm217_vm1, %v812_v29 }
 0x657   :  { %3246 = vmatmul.mubr.msk.f32.vlgmr.msra.gmra.mrb[6].mxu1 %vm217_vm1, %v814_v30 }
 0x722   :  { %v3240_v31 = vpop.f32.mrb[4].mxu1 }
 0x723   :  { %v802_v32 = vpop.f32.mrb[5].mxu1 }
 0x72a   :  { %v3247_v33 = vpop.f32.mrb[6].mxu1 }
 0x72b   :  { %v899_v34 = vadd.f32 %v3247_v33, %v4017_v57  ;;  %v893_v35 = vpop.f32.mrb[7].mxu1  ;;  %v1186_v33 = vld [vmem:[%s4481_s10 + $0x10] sm:$0xff] }
 0x72c   :  { %v894_v36 = vadd.f32 %v893_v35, %v4022_v58  ;;  %v1187_v35 = vld [vmem:[%s4481_s10 + $0x18] sm:$0xff] }
 0x72d   :  { %v905_v38 = vsel %vm301_vm3, %v899_v34, -inf }
 0x72e   :  { %906 = vmax.xlane.f32.xlu0 %v905_v38  ;;  %v902_v40 = vsel %vm301_vm3, %v894_v36, -inf }
 0x72f   :  { %903 = vmax.xlane.f32.xlu1 %v902_v40 }
 0x740   :  { %3652 = vrot.lane.b32.xlu1 %v3986_v45, %s4497_s30  ;;  %s4507_s30 = smov 24  }
 0x744   :  { %1015 = vrot.lane.b32.xlu1 %v4060_v63, %s4501_s21 }
 0x748   :  { %1021 = vrot.lane.b32.xlu1 %v802_v32, %s4495_s1 }
 0x74c   :  { %1023 = vrot.lane.b32.xlu1 %v3240_v31, %s4495_s1  ;;  %s4523_s1 = smov 48  }
 0x7bb   :  { %v907_v41 = vpop.xlane.xlu0 %906 }
 0x7bc   :  { %v909_v43 = vsub.f32 %v899_v34, %v907_v41  ;;  %v904_v46 = vpop.xlane.xlu1 %903 }
 0x7bd   :  { %v908_v47 = vsub.f32 %v894_v36, %v904_v46  ;;  %v3486_v36 = vpack.c.bf16 %v1187_v35, %v1186_v33 }
 0x7be   :  { %v912_v48 = vmul.f32 1.442695, %v909_v43 }
 0x7bf   :  { %v910_v49 = vmul.f32 1.442695, %v908_v47 }
 0x7c0   :  { %v3653_v50 = vpop.permute.xlu1 %3652 }
 0x7c1   :  { %3724 = vpow2.f32 %v910_v49  ;;  %v3655_v51 = vunpack.i.h.bf16 %v3653_v50  ;;  %v3654_v53 = vunpack.i.l.bf16 %v3653_v50 }
 0x7c2   :  { %3726 = vpow2.f32 %v912_v48 }
 0x7c3   :  { %v3470_v45 = vpack.c.bf16 %v3655_v51, %v3654_v53 }
 0x7c4   :  { %v1016_v12 = vpop.permute.xlu1 %1015 }
 0x7c5   :  { %3471 = vmatprep.subr.bf16.mxu0 %v3470_v45  ;;  %v1036_v44 = vsel %vm217_vm1, %v4056_v61, %v1016_v12  ;;  %v1289_v12 = vld [vmem:[%s4483_s12 + $0x18] sm:$0xff] }
 0x7c6   :  { %3473 = vmatpush3.bf16.msra.mxu0 %v3470_v45 }
 0x7c8   :  { %v1022_v13 = vpop.permute.xlu1 %1021 }
 0x7cb   :  { %v3725_v54 = vpop.eup %3724 }
 0x7cc   :  { %v914_v55 = vsel %vm301_vm3, %v3725_v54, 0.0  ;;  %v3727_v56 = vpop.eup %3726  ;;  %v1024_v15 = vpop.permute.xlu1 %1023 }
 0x7cd   :  { %915 = vadd.xlane.f32.xlu0 %v914_v55  ;;  %v917_v59 = vsel %vm301_vm3, %v3727_v56, 0.0  ;;  %v1038_v19 = vsel %vm301_vm3, %v1036_v44, %v1024_v15  ;;  %v1291_v15 = vld [vmem:[%s4483_s12 + $0x28] sm:$0xff]  ;;  %v1293_v44 = vld [vmem:[%s4483_s12 + $0x38] sm:$0xff] }
 0x7d1   :  { %918 = vadd.xlane.f32.xlu0 %v917_v59 }
 0x7e7   :  { %1013 = vrot.lane.b32.xlu0 %v4062_v0, %s4501_s21  ;;  %v1043_v0 = vld [vmem:[%s4477_s6 + $0x8] sm:$0xff] }
 0x7e8   :  { %v3474_v7 = vpack.c.bf16 %v1043_v0, %v1042_v5 }
 0x7ea   :  { %3475 = vmatprep.subr.bf16.mxu0 %v3474_v7 }
 0x85a   :  { %v916_v60 = vpop.xlane.xlu0 %915 }
 0x85b   :  { %3728 = vrcp.f32 %v916_v60  ;;  %v2976_v60 = vld [vmem:[%s4479_s8] ss:$0 sm:$0xff] }
 0x85e   :  { %v919_v63 = vpop.xlane.xlu0 %918 }
 0x85f   :  { %3730 = vrcp.f32 %v919_v63 }
 0x862   :  { %v1014_v14 = vpop.permute.xlu0 %1013 }
 0x863   :  { %v1035_v16 = vsel %vm217_vm1, %v4058_v62, %v1014_v14  ;;  %v2973_v62 = vld [vmem:[%s4478_s7] ss:$0 sm:$0xff] }
 0x864   :  { %v1037_v18 = vsel %vm301_vm3, %v1035_v16, %v1022_v13  ;;  %v1290_v14 = vld [vmem:[%s4483_s12 + $0x20] sm:$0xff] }
 0x865   :  { %v3729_v1 = vpop.eup %3728  ;;  %v3498_v16 = vpack.c.bf16 %v1291_v15, %v1290_v14  ;;  %v2985_v14 = vld [vmem:[%s4486_s15] ss:$0 sm:$0xff] }
 0x866   :  { %v922_v2 = vmul.f32 %v3729_v1, %v3725_v54  ;;  %v2977_v1 = vld [vmem:[%s4480_s9] ss:$0 sm:$0xff] }
 0x868   :  { %3252 = vmatprep.mubr.msk.f32.mxu0 %vm301_vm3, %v922_v2 }
 0x869   :  { %v3731_v3 = vpop.eup %3730 }
 0x86a   :  { %v923_v4 = vmul.f32 %v3731_v3, %v3727_v56 }
 0x86c   :  { %3253 = vmatmul.mubr.msk.f32.vlgmr.msra.gmra.mrb[8].mxu0 %vm301_vm3, %v923_v4 }
 0x86d   :  { %3477 = vmatpush3.bf16.msra.mxu0 %v3474_v7 }
 0x86e   :  { %3479 = vmatprep.subr.bf16.mxu0 %v3478_v9 }
 0x871   :  { %3481 = vmatpush3.bf16.msra.mxu0 %v3478_v9  ;;  %v1287_v9 = vld [vmem:[%s4483_s12 + $0x8] sm:$0xff] }
 0x93f   :  { %v3254_v10 = vpop.f32.mrb[8].mxu0 }
 0x940   :  { %1031 = vrot.lane.b32.xlu1 %v3254_v10, %s4507_s30  ;;  %v1002_v11 = vpop.f32.mrb[9].mxu0  ;;  %v3490_v10 = vpack.c.bf16 %v1287_v9, %v1286_v8 }
 0x941   :  { %1029 = vrot.lane.b32.xlu0 %v1002_v11, %s4507_s30  ;;  %v1288_v11 = vld [vmem:[%s4483_s12 + $0x10] sm:$0xff]  ;;  %s4528_s30 = smov 16  }
 0x942   :  { %3491 = vmatprep.subr.bf16.mxu0 %v3490_v10  ;;  %v3494_v13 = vpack.c.bf16 %v1289_v12, %v1288_v11 }
 0x9b2   :  { %v1032_v17 = vpop.permute.xlu1 %1031 }
 0x9b3   :  { %v1030_v42 = vpop.permute.xlu0 %1029  ;;  %v1041_v21 = vsel %vm1039_vm4, %v1038_v19, %v1032_v17  ;;  %v1292_v17 = vld [vmem:[%s4483_s12 + $0x30] sm:$0xff] }
 0x9b4   :  { %v1040_v20 = vsel %vm1039_vm4, %v1037_v18, %v1030_v42  ;;  %v3502_v18 = vpack.c.bf16 %v1293_v44, %v1292_v17  ;;  %v2978_v42 = vld [vmem:[%s4482_s11] ss:$0 sm:$0xff] }
 0x9b5   :  { %3263 = vmatprep.mubr.msk.f32.mxu0 %vm70_vm0, %v1040_v20 }
 0x9b6   :  { %3264 = vmatmul.mubr.msk.f32.vlgmr.msra.gmra.mrb[10].mxu0 %vm70_vm0, %v1041_v21 }
 0x9b7   :  { %3493 = vmatpush3.bf16.msra.mxu0 %v3490_v10  ;;  %v2984_v10 = vld [vmem:[%s4485_s14] ss:$0 sm:$0xff] }
 0x9b8   :  { %3495 = vmatprep.subr.bf16.mxu0 %v3494_v13 }
 0x9bb   :  { %3497 = vmatpush3.bf16.msra.mxu0 %v3494_v13 }
 0x9bc   :  { %3499 = vmatprep.subr.bf16.mxu0 %v3498_v16 }
 0x9bf   :  { %3501 = vmatpush3.bf16.msra.mxu0 %v3498_v16 }
 0x9c0   :  { %3503 = vmatprep.subr.bf16.mxu0 %v3502_v18 }
 0x9c3   :  { %3505 = vmatpush3.bf16.msra.mxu0 %v3502_v18  ;;  %v2991_v18 = vld [vmem:[%s4476_s5 + $0x1] ss:$0 sm:$0xff]  ;;  %s4521_s5 = smov 80  }
 0xa89   :  { %v3265_v22 = vpop.f32.mrb[10].mxu0 }
 0xa8a   :  { %v1131_v23 = vadd.f32 %v3265_v22, %v2973_v62  ;;  %v1125_v61 = vpop.f32.mrb[11].mxu0 }
 0xa8b   :  { %v1126_v24 = vadd.f32 %v2973_v62, %v1125_v61 }
 0xa8c   :  { %v1135_v25 = vadd.f32 %v1131_v23, %v3971_v39  ;;  %v1184_v39 = vld [vmem:[%s4481_s10] sm:$0xff] }
 0xa8d   :  { %v1134_v26 = vadd.f32 %v1126_v24, %v3967_v37  ;;  %v1185_v37 = vld [vmem:[%s4481_s10 + $0x8] sm:$0xff] }
 0xa8e   :  { %v1141_v27 = vsel %vm70_vm0, %v1135_v25, 0.0  ;;  %v1145_v31 = vmul.f32 %v1135_v25, %v1135_v25  ;;  %v3482_v34 = vpack.c.bf16 %v1185_v37, %v1184_v39 }
 0xa8f   :  { %1142 = vadd.xlane.f32.xlu1 %v1141_v27  ;;  %v1138_v28 = vsel %vm70_vm0, %v1134_v26, 0.0  ;;  %v1144_v29 = vmul.f32 %v1134_v26, %v1134_v26 }
 0xa90   :  { %1139 = vadd.xlane.f32.xlu0 %v1138_v28  ;;  %v1149_v32 = vsel %vm70_vm0, %v1145_v31, 0.0  ;;  %3483 = vmatprep.subr.bf16.mxu1 %v3482_v34  ;;  %v2981_v31 = vld [vmem:[%s4484_s13] ss:$0 sm:$0xff] }
 0xa91   :  { %v1146_v30 = vsel %vm70_vm0, %v1144_v29, 0.0  ;;  %3485 = vmatpush3.bf16.msra.mxu1 %v3482_v34 }
 0xa92   :  { %3487 = vmatprep.subr.bf16.mxu1 %v3486_v36 }
 0xa94   :  { %1147 = vadd.xlane.f32.xlu0 %v1146_v30 }
 0xa95   :  { %3489 = vmatpush3.bf16.msra.mxu1 %v3486_v36 }
 0xa98   :  { %1150 = vadd.xlane.f32.xlu0 %v1149_v32 }
 0xb1c   :  { %v1143_v41 = vpop.xlane.xlu1 %1142 }
 0xb1d   :  { %v1140_v38 = vpop.xlane.xlu0 %1139  ;;  %v1153_v46 = vmul.f32 0.03125, %v1143_v41 }
 0xb1e   :  { %v1152_v40 = vmul.f32 0.03125, %v1140_v38 }
 0xb1f   :  { %v1157_v51 = vmul.f32 %v1153_v46, %v1153_v46  ;;  %v1161_v2 = vsub.f32 %v1135_v25, %v1153_v46 }
 0xb20   :  { %v1156_v47 = vmul.f32 %v1152_v40, %v1152_v40  ;;  %v1160_v56 = vsub.f32 %v1134_v26, %v1152_v40 }
 0xb21   :  { %v1148_v43 = vpop.xlane.xlu0 %1147 }
 0xb22   :  { %v1154_v48 = vmul.f32 0.03125, %v1148_v43 }
 0xb24   :  { %v1158_v49 = vsub.f32 %v1154_v48, %v1156_v47  ;;  %v2986_v47 = vld [vmem:[%s4515_s26 + $0x20] sm:$0xff]  ;;  %v2987_v48 = vld [vmem:[%s4515_s26 + $0x28] sm:$0xff] }
 0xb25   :  { %v1151_v50 = vpop.xlane.xlu0 %1150 }
 0xb26   :  { %v1162_v53 = vadd.f32 1e-12, %v1158_v49  ;;  %v1155_v45 = vmul.f32 0.03125, %v1151_v50  ;;  %v2988_v49 = vld [vmem:[%s4515_s26 + $0x30] sm:$0xff]  ;;  %v3506_v50 = vpack.c.bf16 %v2987_v48, %v2986_v47 }
 0xb28   :  { %3732 = vrsqrt.f32 %v1162_v53  ;;  %v1159_v54 = vsub.f32 %v1155_v45, %v1157_v51  ;;  %v2989_v51 = vld [vmem:[%s4515_s26 + $0x38] sm:$0xff]  ;;  %3507 = vmatprep.subr.bf16.mxu1 %v3506_v50  ;;  %s4527_s26 = smov 8  }
 0xb29   :  { %v3510_v53 = vpack.c.bf16 %v2989_v51, %v2988_v49 }
 0xb2a   :  { %v1163_v55 = vadd.f32 1e-12, %v1159_v54 }
 0xb2c   :  { %3734 = vrsqrt.f32 %v1163_v55 }
 0xb32   :  { %v3733_v59 = vpop.eup %3732 }
 0xb33   :  { %v1166_v63 = vmul.f32 %v3733_v59, %v1160_v56 }
 0xb35   :  { %v1174_v3 = vmul.f32 %v2976_v60, %v1166_v63 }
 0xb36   :  { %v3735_v4 = vpop.eup %3734 }
 0xb37   :  { %v1167_v5 = vmul.f32 %v3735_v4, %v1161_v2  ;;  %v1182_v0 = vadd.f32 %v2977_v1, %v1174_v3 }
 0xb39   :  { %v1175_v6 = vmul.f32 %v2976_v60, %v1167_v5  ;;  %3274 = vmatprep.mubr.msk.f32.mxu1 %vm70_vm0, %v1182_v0 }
 0xb3b   :  { %v1183_v7 = vadd.f32 %v2977_v1, %v1175_v6 }
 0xb3d   :  { %3275 = vmatmul.mubr.msk.f32.vlgmr.msra.gmra.mrb[8].mxu1 %vm70_vm0, %v1183_v7 }
 0xb3e   :  { %3509 = vmatpush3.bf16.msra.mxu1 %v3506_v50 }
 0xb3f   :  { %3511 = vmatprep.subr.bf16.mxu1 %v3510_v53 }
 0xb42   :  { %3513 = vmatpush3.bf16.msra.mxu1 %v3510_v53 }
 0xc10   :  { %v3276_v19 = vpop.f32.mrb[8].mxu1 }
 0xc11   :  { %v1273_v20 = vadd.f32 %v3276_v19, %v2978_v42  ;;  %v1267_v21 = vpop.f32.mrb[9].mxu1 }
 0xc12   :  { %v1268_v62 = vadd.f32 %v2978_v42, %v1267_v21 }
 0xc13   :  { %v1279_v22 = vmul.f32 0.70710677, %v1273_v20  ;;  %v1277_v28 = vmul.f32 0.5, %v1273_v20 }
 0xc14   :  { %v1278_v23 = vmul.f32 0.70710677, %v1268_v62  ;;  %v1276_v26 = vmul.f32 0.5, %v1268_v62 }
 0xc15   :  { %3736 = verf.f32 %v1279_v22 }
 0xc16   :  { %3738 = verf.f32 %v1278_v23 }
 0xc1f   :  { %v3737_v61 = vpop.eup %3736 }
 0xc20   :  { %v3739_v24 = vpop.eup %3738  ;;  %v1283_v25 = vadd.f32 1.0, %v3737_v61 }
 0xc21   :  { %v1282_v27 = vadd.f32 1.0, %v3739_v24 }
 0xc22   :  { %v1285_v30 = vmul.f32 %v1283_v25, %v1277_v28 }
 0xc23   :  { %v1284_v29 = vmul.f32 %v1282_v27, %v1276_v26 }
 0xc25   :  { %3293 = vmatprep.mubr.msk.f32.mxu0 %vm1301_vm5, %v1284_v29 }
 0xc26   :  { %3294 = vmatmul.mubr.msk.f32.vlgmr.msra.gmra.mrb[12].mxu0 %vm1301_vm5, %v1285_v30 }
 0xcf9   :  { %v3295_v32 = vpop.f32.mrb[12].mxu0 }
 0xcfa   :  { %v1380_v39 = vadd.f32 %v3295_v32, %v2981_v31  ;;  %v1374_v37 = vpop.f32.mrb[13].mxu0 }
 0xcfb   :  { %v1375_v33 = vadd.f32 %v2981_v31, %v1374_v37 }
 0xcfc   :  { %v1384_v34 = vadd.f32 %v1380_v39, %v1183_v7 }
 0xcfd   :  { %v1383_v35 = vadd.f32 %v1375_v33, %v1182_v0 }
 0xcfe   :  { %v1390_v36 = vsel %vm70_vm0, %v1384_v34, 0.0  ;;  %v1394_v38 = vmul.f32 %v1384_v34, %v1384_v34 }
 0xcff   :  { %1391 = vadd.xlane.f32.xlu1 %v1390_v36  ;;  %v1387_v40 = vsel %vm70_vm0, %v1383_v35, 0.0  ;;  %v1393_v41 = vmul.f32 %v1383_v35, %v1383_v35 }
 0xd00   :  { %1388 = vadd.xlane.f32.xlu0 %v1387_v40  ;;  %v1398_v43 = vsel %vm70_vm0, %v1394_v38, 0.0 }
 0xd01   :  { %v1395_v46 = vsel %vm70_vm0, %v1393_v41, 0.0 }
 0xd03   :  { %1399 = vadd.xlane.f32.xlu1 %v1398_v43 }
 0xd04   :  { %1396 = vadd.xlane.f32.xlu0 %v1395_v46 }
 0xd8c   :  { %v1392_v45 = vpop.xlane.xlu1 %1391 }
 0xd8d   :  { %v1402_v54 = vmul.f32 0.03125, %v1392_v45  ;;  %v1389_v55 = vpop.xlane.xlu0 %1388 }
 0xd8e   :  { %v1401_v56 = vmul.f32 0.03125, %v1389_v55 }
 0xd8f   :  { %v1406_v60 = vmul.f32 %v1402_v54, %v1402_v54  ;;  %v1410_v7 = vsub.f32 %v1384_v34, %v1402_v54 }
 0xd90   :  { %v1400_v59 = vpop.xlane.xlu1 %1399  ;;  %v1405_v2 = vmul.f32 %v1401_v56, %v1401_v56  ;;  %v1409_v9 = vsub.f32 %v1383_v35, %v1401_v56 }
 0xd91   :  { %v1404_v63 = vmul.f32 0.03125, %v1400_v59  ;;  %v1397_v1 = vpop.xlane.xlu0 %1396 }
 0xd92   :  { %v1403_v3 = vmul.f32 0.03125, %v1397_v1 }
 0xd93   :  { %v1408_v4 = vsub.f32 %v1404_v63, %v1406_v60 }
 0xd94   :  { %v1407_v5 = vsub.f32 %v1403_v3, %v1405_v2 }
 0xd95   :  { %v1412_v0 = vadd.f32 1e-12, %v1408_v4 }
 0xd96   :  { %v1411_v6 = vadd.f32 1e-12, %v1407_v5 }
 0xd97   :  { %3740 = vrsqrt.f32 %v1412_v0 }
 0xd98   :  { %3742 = vrsqrt.f32 %v1411_v6 }
 0xda1   :  { %v3741_v8 = vpop.eup %3740 }
 0xda2   :  { %v3743_v11 = vpop.eup %3742  ;;  %v1416_v12 = vmul.f32 %v3741_v8, %v1410_v7 }
 0xda3   :  { %v1415_v13 = vmul.f32 %v3743_v11, %v1409_v9 }
 0xda4   :  { %v1424_v15 = vmul.f32 %v2984_v10, %v1416_v12 }
 0xda5   :  { %v1423_v16 = vmul.f32 %v2984_v10, %v1415_v13 }
 0xda6   :  { %v4211_v44 = vadd.f32 %v2985_v14, %v1424_v15 }
 0xda7   :  { %v4209_v17 = vadd.f32 %v2985_v14, %v1423_v16 }
 0xda9   :  { %3304 = vmatprep.mubr.msk.f32.mxu1 %vm70_vm0, %v4209_v17 }
 0xdaa   :  { %3305 = vmatmul.mubr.msk.f32.vlgmr.msra.gmra.mrb[10].mxu1 %vm70_vm0, %v4211_v44 }
 0xe7d   :  { %v3306_v42 = vpop.f32.mrb[10].mxu1 }
 0xe7e   :  { %v4220_v19 = vadd.f32 %v3306_v42, %v2991_v18  ;;  %v1518_v20 = vpop.f32.mrb[11].mxu1 }
 0xe7f   :  { %v4222_v21 = vadd.f32 %v2991_v18, %v1518_v20 }
 0xe81   :  { %3311 = vmatprep.mubr.msk.f32.mxu1 %vm217_vm1, %v4222_v21  ;;  %v4228_v62 = vpack.i.bf16 %v4220_v19, %v4222_v21 }
 0xe83   :  { %3662 = vrot.lane.b32.xlu1 %v4228_v62, %s3816_s27  ;;  %3657 = vrot.lane.b32.xlu0 %v4228_v62, %s3817_s28  ;;  %s4522_s27 = smov 112  }
 0xe87   :  { %1725 = vrot.lane.b32.xlu1 %v4222_v21, %s3818_s4 }
 0xe8b   :  { %1727 = vrot.lane.b32.xlu1 %v4220_v19, %s3818_s4 }
 0xef5   :  { %v3663_v22 = vpop.permute.xlu1 %3662  ;;  %v3658_v23 = vpop.permute.xlu0 %3657 }
 0xef6   :  { %v3665_v61 = vunpack.i.h.bf16 %v3663_v22  ;;  %v3664_v24 = vunpack.i.l.bf16 %v3663_v22  ;;  %v3660_v25 = vunpack.i.h.bf16 %v3658_v23  ;;  %v3659_v26 = vunpack.i.l.bf16 %v3658_v23 }
 0xef8   :  { %v3514_v27 = vpack.c.bf16 %v3660_v25, %v3659_v26  ;;  %v3524_v28 = vpack.c.bf16 %v3665_v61, %v3664_v24 }
 0xef9   :  { %v1726_v29 = vpop.permute.xlu1 %1725 }
 0xefa   :  { %3516 = vmatprep.subr.msk.bf16.mxu1 %vm3998_vm2, %v3514_v27 }
 0xefb   :  { %3519 = vmatpush3.bf16.xpose.msk.msra.mxu1 %vm3998_vm2, %v3514_v27 }
 0xefc   :  { %3526 = vmatprep.subr.msk.bf16.mxu1 %vm3998_vm2, %v3524_v28 }
 0xefd   :  { %v1728_v30 = vpop.permute.xlu1 %1727 }
 0xf02   :  { %3312 = vmatmul.mubr.msk.f32.vlgmr.msra.gmra.mrb[12].mxu1 %vm217_vm1, %v4220_v19 }
 0xf03   :  { %3529 = vmatpush3.bf16.xpose.msk.msra.mxu1 %vm3998_vm2, %v3524_v28  ;;  %3325 = vmatprep.mubr.msk.f32.mxu1 %vm217_vm1, %v1726_v29 }
 0xf0a   :  { %3326 = vmatmul.mubr.msk.f32.vlgmr.msra.gmra.mrb[14].mxu1 %vm217_vm1, %v1728_v30 }
 0xfd5   :  { %v3313_v31 = vpop.f32.mrb[12].mxu1 }
 0xfd6   :  { %v1613_v32 = vadd.f32 %v3313_v31, %v4017_v57  ;;  %v1607_v39 = vpop.f32.mrb[13].mxu1 }
 0xfd7   :  { %v1608_v37 = vadd.f32 %v1607_v39, %v4022_v58 }
 0xfd8   :  { %v1619_v33 = vsel %vm301_vm3, %v1613_v32, -inf }
 0xfd9   :  { %1620 = vmax.xlane.f32.xlu1 %v1619_v33  ;;  %v1616_v34 = vsel %vm301_vm3, %v1608_v37, -inf }
 0xfda   :  { %1617 = vmax.xlane.f32.xlu0 %v1616_v34  ;;  %v3790_v34 = vld [vmem:[%s4520_s0 + $0x8] sm:$0xff] }
 0xfdd   :  { %v3327_v35 = vpop.f32.mrb[14].mxu1 }
 0xfde   :  { %v1807_v36 = vpop.f32.mrb[15].mxu1  ;;  %v1813_v40 = vadd.f32 %v3327_v35, %v4017_v57 }
 0xfdf   :  { %v1808_v38 = vadd.f32 %v1807_v36, %v4022_v58 }
 0xfe0   :  { %v1819_v43 = vsel %vm301_vm3, %v1813_v40, -inf }
 0xfe1   :  { %v1816_v41 = vsel %vm301_vm3, %v1808_v38, -inf }
 0xfe2   :  { %1817 = vmax.xlane.f32.xlu0 %v1816_v41 }
 0xfe6   :  { %1820 = vmax.xlane.f32.xlu0 %v1819_v43 }
0x1066   :  { %v1621_v46 = vpop.xlane.xlu1 %1620 }
0x1067   :  { %v1623_v47 = vsub.f32 %v1613_v32, %v1621_v46  ;;  %v1618_v48 = vpop.xlane.xlu0 %1617 }
0x1068   :  { %v1622_v49 = vsub.f32 %v1608_v37, %v1618_v48 }
0x1069   :  { %v1626_v50 = vmul.f32 1.442695, %v1623_v47 }
0x106a   :  { %v1624_v51 = vmul.f32 1.442695, %v1622_v49 }
0x106b   :  { %3744 = vpow2.f32 %v1626_v50 }
0x106c   :  { %3746 = vpow2.f32 %v1624_v51 }
0x106f   :  { %v1818_v53 = vpop.xlane.xlu0 %1817 }
0x1070   :  { %v1822_v45 = vsub.f32 %v1808_v38, %v1818_v53  ;;  %v3791_v38 = vld [vmem:[%s4520_s0] sm:$0xff]  ;;  %s4525_s0 = smov 72  }
0x1072   :  { %v1824_v54 = vmul.f32 1.442695, %v1822_v45 }
0x1073   :  { %v1821_v58 = vpop.xlane.xlu0 %1820 }
0x1074   :  { %3748 = vpow2.f32 %v1824_v54  ;;  %v1823_v57 = vsub.f32 %v1813_v40, %v1821_v58 }
0x1075   :  { %v3745_v55 = vpop.eup %3744 }
0x1076   :  { %v3747_v56 = vpop.eup %3746  ;;  %v1826_v59 = vmul.f32 1.442695, %v1823_v57  ;;  %v1631_v60 = vsel %vm301_vm3, %v3745_v55, 0.0 }
0x1077   :  { %1632 = vadd.xlane.f32.xlu1 %v1631_v60  ;;  %v1628_v63 = vsel %vm301_vm3, %v3747_v56, 0.0 }
0x1078   :  { %3750 = vpow2.f32 %v1826_v59  ;;  %1629 = vadd.xlane.f32.xlu0 %v1628_v63 }
0x107e   :  { %v3749_v1 = vpop.eup %3748 }
0x107f   :  { %v1828_v2 = vsel %vm301_vm3, %v3749_v1, 0.0 }
0x1080   :  { %1829 = vadd.xlane.f32.xlu0 %v1828_v2 }
0x1082   :  { %v3751_v3 = vpop.eup %3750 }
0x1083   :  { %v1831_v4 = vsel %vm301_vm3, %v3751_v3, 0.0 }
0x1084   :  { %1832 = vadd.xlane.f32.xlu1 %v1831_v4 }
0x1095   :  { %3672 = vrot.lane.b32.xlu1 %v4228_v62, %s3819_s22  ;;  %s4529_s22 = smov 24  }
0x1096   :  { %3667 = vrot.lane.b32.xlu0 %v4228_v62, %s3820_s23 }
0x1099   :  { %3677 = vrot.lane.b32.xlu1 %v4228_v62, %s4521_s5 }
0x109a   :  { %1927 = vrot.lane.b32.xlu0 %v4220_v19, %s4522_s27 }
0x109d   :  { %1925 = vrot.lane.b32.xlu1 %v4222_v21, %s4522_s27 }
0x1104   :  { %v1633_v0 = vpop.xlane.xlu1 %1632 }
0x1105   :  { %v1630_v5 = vpop.xlane.xlu0 %1629 }
0x1106   :  { %3752 = vrcp.f32 %v1630_v5 }
0x1107   :  { %3754 = vrcp.f32 %v1633_v0 }
0x110d   :  { %v1830_v6 = vpop.xlane.xlu0 %1829 }
0x110e   :  { %3756 = vrcp.f32 %v1830_v6 }
0x1110   :  { %v3753_v7 = vpop.eup %3752 }
0x1111   :  { %v1833_v8 = vpop.xlane.xlu1 %1832  ;;  %v3668_v9 = vpop.permute.xlu0 %3667  ;;  %v1636_v10 = vmul.f32 %v3753_v7, %v3747_v56 }
0x1112   :  { %3758 = vrcp.f32 %v1833_v8  ;;  %v3670_v11 = vunpack.i.h.bf16 %v3668_v9  ;;  %v3669_v12 = vunpack.i.l.bf16 %v3668_v9  ;;  %v3755_v14 = vpop.eup %3754 }
0x1113   :  { %3318 = vmatprep.mubr.msk.f32.mxu0 %vm301_vm3, %v1636_v10  ;;  %v1637_v20 = vmul.f32 %v3755_v14, %v3745_v55 }
0x1114   :  { %v3520_v13 = vpack.c.bf16 %v3670_v11, %v3669_v12 }
0x1115   :  { %v3673_v15 = vpop.permute.xlu1 %3672  ;;  %v1928_v30 = vpop.permute.xlu0 %1927 }
0x1116   :  { %v3675_v16 = vunpack.i.h.bf16 %v3673_v15  ;;  %v3674_v18 = vunpack.i.l.bf16 %v3673_v15  ;;  %3521 = vmatprep.subr.bf16.mxu0 %v3520_v13 }
0x1117   :  { %3523 = vmatpush3.bf16.msra.mxu0 %v3520_v13 }
0x1118   :  { %v3757_v42 = vpop.eup %3756  ;;  %v3530_v22 = vpack.c.bf16 %v3675_v16, %v3674_v18 }
0x1119   :  { %v3678_v23 = vpop.permute.xlu1 %3677  ;;  %v1836_v61 = vmul.f32 %v3757_v42, %v3749_v1 }
0x111a   :  { %v3680_v24 = vunpack.i.h.bf16 %v3678_v23  ;;  %v3679_v25 = vunpack.i.l.bf16 %v3678_v23  ;;  %3319 = vmatmul.mubr.msk.f32.vlgmr.msra.gmra.mrb[14].mxu0 %vm301_vm3, %v1637_v20  ;;  %3531 = vmatprep.subr.bf16.mxu0 %v3530_v22 }
0x111b   :  { %3533 = vmatpush3.bf16.msra.mxu0 %v3530_v22  ;;  %3332 = vmatprep.mubr.msk.f32.mxu0 %vm301_vm3, %v1836_v61 }
0x111c   :  { %v3759_v26 = vpop.eup %3758  ;;  %v3534_v27 = vpack.c.bf16 %v3680_v24, %v3679_v25 }
0x111d   :  { %v1837_v28 = vmul.f32 %v3759_v26, %v3751_v3  ;;  %v1926_v29 = vpop.permute.xlu1 %1925 }
0x111e   :  { %3536 = vmatprep.subr.msk.bf16.mxu0 %vm3998_vm2, %v3534_v27 }
0x111f   :  { %3333 = vmatmul.mubr.msk.f32.vlgmr.msra.gmra.mrb[16].mxu0 %vm301_vm3, %v1837_v28 }
0x1120   :  { %3339 = vmatprep.mubr.msk.f32.mxu0 %vm217_vm1, %v1926_v29 }
0x1124   :  { %3539 = vmatpush3.bf16.xpose.msk.msra.mxu0 %vm3998_vm2, %v3534_v27 }
0x112b   :  { %3340 = vmatmul.mubr.msk.f32.vlgmr.msra.gmra.mrb[18].mxu0 %vm217_vm1, %v1928_v30 }
0x11ed   :  { %v4282_v31 = vpop.f32.mrb[14].mxu0 }
0x11ee   :  { %v4284_v32 = vpop.f32.mrb[15].mxu0 }
0x11f2   :  { %v4286_v39 = vpop.f32.mrb[16].mxu0 }
0x11f3   :  { %v4288_v37 = vpop.f32.mrb[17].mxu0 }
0x11fe   :  { %v3341_v33 = vpop.f32.mrb[18].mxu0 }
0x11ff   :  { %v2013_v35 = vadd.f32 %v3790_v34, %v3341_v33  ;;  %v2007_v36 = vpop.f32.mrb[19].mxu0 }
0x1200   :  { %v2008_v40 = vadd.f32 %v3791_v38, %v2007_v36  ;;  %v3018_v36 = vld [vmem:[%s4477_s6 + $0x20] sm:$0xff] }
0x1201   :  { %v2019_v41 = vsel %vm301_vm3, %v2013_v35, -inf }
0x1202   :  { %2020 = vmax.xlane.f32.xlu0 %v2019_v41  ;;  %v2016_v43 = vsel %vm301_vm3, %v2008_v40, -inf  ;;  %v3021_v41 = vld [vmem:[%s4477_s6 + $0x38] sm:$0xff] }
0x1203   :  { %2017 = vmax.xlane.f32.xlu1 %v2016_v43 }
0x1214   :  { %3682 = vrot.lane.b32.xlu1 %v4228_v62, %s4523_s1 }
0x1218   :  { %2125 = vrot.lane.b32.xlu1 %v4222_v21, %s4524_s24 }
0x121c   :  { %2127 = vrot.lane.b32.xlu1 %v4220_v19, %s4524_s24 }
0x128f   :  { %v2021_v46 = vpop.xlane.xlu0 %2020 }
0x1290   :  { %v2023_v47 = vsub.f32 %v2013_v35, %v2021_v46  ;;  %v2018_v48 = vpop.xlane.xlu1 %2017 }
0x1291   :  { %v2022_v49 = vsub.f32 %v2008_v40, %v2018_v48 }
0x1292   :  { %v2026_v50 = vmul.f32 1.442695, %v2023_v47 }
0x1293   :  { %v2024_v51 = vmul.f32 1.442695, %v2022_v49 }
0x1294   :  { %3760 = vpow2.f32 %v2026_v50  ;;  %v3683_v53 = vpop.permute.xlu1 %3682 }
0x1295   :  { %v3685_v45 = vunpack.i.h.bf16 %v3683_v53  ;;  %v3684_v54 = vunpack.i.l.bf16 %v3683_v53  ;;  %3762 = vpow2.f32 %v2024_v51 }
0x1297   :  { %v3540_v58 = vpack.c.bf16 %v3685_v45, %v3684_v54 }
0x1298   :  { %v2126_v6 = vpop.permute.xlu1 %2125 }
0x1299   :  { %3541 = vmatprep.subr.bf16.mxu1 %v3540_v58 }
0x129a   :  { %3543 = vmatpush3.bf16.msra.mxu1 %v3540_v58 }
0x129c   :  { %v2128_v7 = vpop.permute.xlu1 %2127 }
0x129e   :  { %v3761_v57 = vpop.eup %3760 }
0x129f   :  { %v2031_v21 = vsel %vm301_vm3, %v3761_v57, 0.0  ;;  %v3763_v55 = vpop.eup %3762 }
0x12a0   :  { %2032 = vadd.xlane.f32.xlu0 %v2031_v21  ;;  %v2028_v19 = vsel %vm301_vm3, %v3763_v55, 0.0 }
0x12a4   :  { %2029 = vadd.xlane.f32.xlu0 %v2028_v19 }
0x12ba   :  { %3687 = vrot.lane.b32.xlu0 %v4228_v62, %s4525_s0 }
0x132d   :  { %v2033_v56 = vpop.xlane.xlu0 %2032 }
0x132e   :  { %3764 = vrcp.f32 %v2033_v56 }
0x1331   :  { %v2030_v59 = vpop.xlane.xlu0 %2029 }
0x1332   :  { %3766 = vrcp.f32 %v2030_v59 }
0x1335   :  { %v3688_v60 = vpop.permute.xlu0 %3687 }
0x1336   :  { %v3690_v63 = vunpack.i.h.bf16 %v3688_v60  ;;  %v3689_v1 = vunpack.i.l.bf16 %v3688_v60 }
0x1338   :  { %v3544_v2 = vpack.c.bf16 %v3690_v63, %v3689_v1  ;;  %v3765_v3 = vpop.eup %3764 }
0x1339   :  { %v2037_v0 = vmul.f32 %v3765_v3, %v3761_v57 }
0x133a   :  { %3546 = vmatprep.subr.msk.bf16.mxu1 %vm3998_vm2, %v3544_v2 }
0x133c   :  { %v3767_v4 = vpop.eup %3766 }
0x133d   :  { %v2036_v5 = vmul.f32 %v3767_v4, %v3763_v55 }
0x133f   :  { %3346 = vmatprep.mubr.msk.f32.mxu1 %vm301_vm3, %v2036_v5 }
0x1340   :  { %3347 = vmatmul.mubr.msk.f32.vlgmr.msra.gmra.mrb[16].mxu1 %vm301_vm3, %v2037_v0 }
0x1341   :  { %3549 = vmatpush3.bf16.xpose.msk.msra.mxu1 %vm3998_vm2, %v3544_v2  ;;  %3353 = vmatprep.mubr.msk.f32.mxu1 %vm217_vm1, %v2126_v6 }
0x1348   :  { %3354 = vmatmul.mubr.msk.f32.vlgmr.msra.gmra.mrb[18].mxu1 %vm217_vm1, %v2128_v7  ;;  %v3032_v7 = vld [vmem:[%s4481_s10 + $0x30] sm:$0xff] }
0x1413   :  { %v3348_v8 = vpop.f32.mrb[16].mxu1 }
0x1414   :  { %v2116_v9 = vpop.f32.mrb[17].mxu1 }
0x141b   :  { %v3355_v10 = vpop.f32.mrb[18].mxu1 }
0x141c   :  { %v2213_v11 = vadd.f32 %v3790_v34, %v3355_v10  ;;  %v2207_v12 = vpop.f32.mrb[19].mxu1 }
0x141d   :  { %v2208_v13 = vadd.f32 %v3791_v38, %v2207_v12  ;;  %v3020_v38 = vld [vmem:[%s4477_s6 + $0x30] sm:$0xff] }
0x141e   :  { %v2219_v14 = vsel %vm301_vm3, %v2213_v11, -inf  ;;  %v3558_v43 = vpack.c.bf16 %v3021_v41, %v3020_v38  ;;  %v3039_v38 = vld [vmem:[%s4483_s12 + $0x48] sm:$0xff]  ;;  %v3040_v41 = vld [vmem:[%s4483_s12 + $0x50] sm:$0xff] }
0x141f   :  { %2220 = vmax.xlane.f32.xlu0 %v2219_v14  ;;  %v2216_v15 = vsel %vm301_vm3, %v2208_v13, -inf }
0x1420   :  { %2217 = vmax.xlane.f32.xlu1 %v2216_v15 }
0x1431   :  { %3692 = vrot.lane.b32.xlu1 %v4228_v62, %s4526_s2 }
0x1435   :  { %2329 = vrot.lane.b32.xlu1 %v4286_v39, %s4527_s26 }
0x1439   :  { %2335 = vrot.lane.b32.xlu1 %v2116_v9, %s4528_s30  ;;  %v3033_v9 = vld [vmem:[%s4481_s10 + $0x38] sm:$0xff] }
0x143a   :  { %v3566_v10 = vpack.c.bf16 %v3033_v9, %v3032_v7 }
0x143d   :  { %2337 = vrot.lane.b32.xlu1 %v3348_v8, %s4528_s30 }
0x14ac   :  { %v2221_v52 = vpop.xlane.xlu0 %2220 }
0x14ad   :  { %v2223_v16 = vsub.f32 %v2213_v11, %v2221_v52  ;;  %v2218_v18 = vpop.xlane.xlu1 %2217 }
0x14ae   :  { %v2222_v42 = vsub.f32 %v2208_v13, %v2218_v18 }
0x14af   :  { %v2226_v20 = vmul.f32 1.442695, %v2223_v16 }
0x14b0   :  { %v2224_v22 = vmul.f32 1.442695, %v2222_v42 }
0x14b1   :  { %v3693_v23 = vpop.permute.xlu1 %3692 }
0x14b2   :  { %3768 = vpow2.f32 %v2224_v22  ;;  %v3695_v61 = vunpack.i.h.bf16 %v3693_v23  ;;  %v3694_v24 = vunpack.i.l.bf16 %v3693_v23 }
0x14b3   :  { %3770 = vpow2.f32 %v2226_v20 }
0x14b4   :  { %v3550_v25 = vpack.c.bf16 %v3695_v61, %v3694_v24 }
0x14b5   :  { %v2330_v48 = vpop.permute.xlu1 %2329 }
0x14b6   :  { %3551 = vmatprep.subr.bf16.mxu0 %v3550_v25  ;;  %v2350_v54 = vsel %vm217_vm1, %v4282_v31, %v2330_v48  ;;  %v3043_v48 = vld [vmem:[%s4483_s12 + $0x68] sm:$0xff] }
0x14b7   :  { %3553 = vmatpush3.bf16.msra.mxu0 %v3550_v25 }
0x14b9   :  { %v2336_v49 = vpop.permute.xlu1 %2335 }
0x14bc   :  { %v3769_v62 = vpop.eup %3768 }
0x14bd   :  { %v2228_v26 = vsel %vm301_vm3, %v3769_v62, 0.0  ;;  %v3771_v27 = vpop.eup %3770  ;;  %v2338_v51 = vpop.permute.xlu1 %2337 }
0x14be   :  { %2229 = vadd.xlane.f32.xlu0 %v2228_v26  ;;  %v2231_v28 = vsel %vm301_vm3, %v3771_v27, 0.0  ;;  %v2352_v21 = vsel %vm301_vm3, %v2350_v54, %v2338_v51  ;;  %v3028_v26 = vld [vmem:[%s4479_s8 + $0x1] ss:$0 sm:$0xff]  ;;  %v3045_v51 = vld [vmem:[%s4483_s12 + $0x78] sm:$0xff] }
0x14c2   :  { %2232 = vadd.xlane.f32.xlu0 %v2231_v28  ;;  %v3029_v28 = vld [vmem:[%s4480_s9 + $0x1] ss:$0 sm:$0xff] }
0x14d8   :  { %2327 = vrot.lane.b32.xlu0 %v4288_v37, %s4527_s26  ;;  %v3019_v37 = vld [vmem:[%s4477_s6 + $0x28] sm:$0xff] }
0x14d9   :  { %v3554_v40 = vpack.c.bf16 %v3019_v37, %v3018_v36  ;;  %v3038_v37 = vld [vmem:[%s4483_s12 + $0x40] sm:$0xff] }
0x14db   :  { %3555 = vmatprep.subr.bf16.mxu0 %v3554_v40 }
0x154b   :  { %v2230_v29 = vpop.xlane.xlu0 %2229 }
0x154c   :  { %3772 = vrcp.f32 %v2230_v29 }
0x154f   :  { %v2233_v30 = vpop.xlane.xlu0 %2232 }
0x1550   :  { %3774 = vrcp.f32 %v2233_v30 }
0x1553   :  { %v2328_v50 = vpop.permute.xlu0 %2327 }
0x1554   :  { %v2349_v53 = vsel %vm217_vm1, %v4284_v32, %v2328_v50  ;;  %v3023_v32 = vld [vmem:[%s4478_s7 + $0x1] ss:$0 sm:$0xff]  ;;  %v3044_v50 = vld [vmem:[%s4483_s12 + $0x70] sm:$0xff] }
0x1555   :  { %v2351_v58 = vsel %vm301_vm3, %v2349_v53, %v2336_v49  ;;  %v3582_v53 = vpack.c.bf16 %v3045_v51, %v3044_v50 }
0x1556   :  { %v3773_v39 = vpop.eup %3772 }
0x1557   :  { %v2236_v33 = vmul.f32 %v3773_v39, %v3769_v62 }
0x1559   :  { %3360 = vmatprep.mubr.msk.f32.mxu0 %vm301_vm3, %v2236_v33 }
0x155a   :  { %v3775_v34 = vpop.eup %3774 }
0x155b   :  { %v2237_v35 = vmul.f32 %v3775_v34, %v3771_v27 }
0x155d   :  { %3361 = vmatmul.mubr.msk.f32.vlgmr.msra.gmra.mrb[20].mxu0 %vm301_vm3, %v2237_v35 }
0x155e   :  { %3557 = vmatpush3.bf16.msra.mxu0 %v3554_v40  ;;  %v3570_v40 = vpack.c.bf16 %v3039_v38, %v3038_v37  ;;  %v3052_v38 = vld [vmem:[%s4485_s14 + $0x1] ss:$0 sm:$0xff] }
0x155f   :  { %3559 = vmatprep.subr.bf16.mxu0 %v3558_v43 }
0x1562   :  { %3561 = vmatpush3.bf16.msra.mxu0 %v3558_v43  ;;  %v3041_v43 = vld [vmem:[%s4483_s12 + $0x58] sm:$0xff] }
0x1563   :  { %3571 = vmatprep.subr.bf16.mxu0 %v3570_v40 }
0x1630   :  { %v3362_v46 = vpop.f32.mrb[20].mxu0 }
0x1631   :  { %2345 = vrot.lane.b32.xlu1 %v3362_v46, %s4529_s22  ;;  %v2316_v47 = vpop.f32.mrb[21].mxu0  ;;  %v3574_v46 = vpack.c.bf16 %v3041_v43, %v3040_v41 }
0x1632   :  { %2343 = vrot.lane.b32.xlu0 %v2316_v47, %s4529_s22  ;;  %v3042_v47 = vld [vmem:[%s4483_s12 + $0x60] sm:$0xff] }
0x1633   :  { %v3578_v49 = vpack.c.bf16 %v3043_v48, %v3042_v47 }
0x16a3   :  { %v2346_v45 = vpop.permute.xlu1 %2345 }
0x16a4   :  { %v2344_v57 = vpop.permute.xlu0 %2343  ;;  %v2354_v19 = vsel %vm1039_vm4, %v2352_v21, %v2346_v45  ;;  %v3035_v45 = vld [vmem:[%s4482_s11 + $0x1] ss:$0 sm:$0xff] }
0x16a5   :  { %v2353_v55 = vsel %vm1039_vm4, %v2351_v58, %v2344_v57 }
0x16a6   :  { %3371 = vmatprep.mubr.msk.f32.mxu0 %vm70_vm0, %v2353_v55 }
0x16a7   :  { %3372 = vmatmul.mubr.msk.f32.vlgmr.msra.gmra.mrb[22].mxu0 %vm70_vm0, %v2354_v19 }
0x16a8   :  { %3573 = vmatpush3.bf16.msra.mxu0 %v3570_v40 }
0x16a9   :  { %3575 = vmatprep.subr.bf16.mxu0 %v3574_v46 }
0x16ac   :  { %3577 = vmatpush3.bf16.msra.mxu0 %v3574_v46  ;;  %v3053_v46 = vld [vmem:[%s4486_s15 + $0x1] ss:$0 sm:$0xff] }
0x16ad   :  { %3579 = vmatprep.subr.bf16.mxu0 %v3578_v49 }
0x16b0   :  { %3581 = vmatpush3.bf16.msra.mxu0 %v3578_v49 }
0x16b1   :  { %3583 = vmatprep.subr.bf16.mxu0 %v3582_v53 }
0x16b4   :  { %3585 = vmatpush3.bf16.msra.mxu0 %v3582_v53 }
0x177a   :  { %v3373_v56 = vpop.f32.mrb[22].mxu0 }
0x177b   :  { %v2446_v59 = vadd.f32 %v3373_v56, %v3023_v32  ;;  %v2440_v31 = vpop.f32.mrb[23].mxu0 }
0x177c   :  { %v2441_v60 = vadd.f32 %v3023_v32, %v2440_v31 }
0x177d   :  { %v2450_v63 = vadd.f32 %v2446_v59, %v4211_v44  ;;  %v3030_v44 = vld [vmem:[%s4481_s10 + $0x20] sm:$0xff] }
0x177e   :  { %v2449_v1 = vadd.f32 %v2441_v60, %v4209_v17  ;;  %v3031_v17 = vld [vmem:[%s4481_s10 + $0x28] sm:$0xff] }
0x177f   :  { %v2458_v2 = vsel %vm70_vm0, %v2450_v63, 0.0  ;;  %v2462_v0 = vmul.f32 %v2450_v63, %v2450_v63  ;;  %v3562_v8 = vpack.c.bf16 %v3031_v17, %v3030_v44 }
0x1780   :  { %2459 = vadd.xlane.f32.xlu1 %v2458_v2  ;;  %v2455_v3 = vsel %vm70_vm0, %v2449_v1, 0.0  ;;  %v2461_v4 = vmul.f32 %v2449_v1, %v2449_v1 }
0x1781   :  { %2456 = vadd.xlane.f32.xlu0 %v2455_v3  ;;  %v2466_v6 = vsel %vm70_vm0, %v2462_v0, 0.0  ;;  %3563 = vmatprep.subr.bf16.mxu1 %v3562_v8  ;;  %v3047_v3 = vld [vmem:[%s4484_s13 + $0x1] ss:$0 sm:$0xff] }
0x1782   :  { %v2463_v5 = vsel %vm70_vm0, %v2461_v4, 0.0  ;;  %3565 = vmatpush3.bf16.msra.mxu1 %v3562_v8 }
0x1783   :  { %3567 = vmatprep.subr.bf16.mxu1 %v3566_v10 }
0x1785   :  { %2464 = vadd.xlane.f32.xlu0 %v2463_v5 }
0x1786   :  { %3569 = vmatpush3.bf16.msra.mxu1 %v3566_v10 }
0x1789   :  { %2467 = vadd.xlane.f32.xlu0 %v2466_v6 }
0x180d   :  { %v2460_v13 = vpop.xlane.xlu1 %2459 }
0x180e   :  { %v2457_v11 = vpop.xlane.xlu0 %2456  ;;  %v2470_v15 = vmul.f32 0.03125, %v2460_v13  ;;  %v2760_v13 = vld [vmem:[%s4487_s16] sm:$0xff] }
0x180f   :  { %v2469_v12 = vmul.f32 0.03125, %v2457_v11 }
0x1810   :  { %v2474_v20 = vmul.f32 %v2470_v15, %v2470_v15  ;;  %v2478_v29 = vsub.f32 %v2450_v63, %v2470_v15 }
0x1811   :  { %v2473_v52 = vmul.f32 %v2469_v12, %v2469_v12  ;;  %v2477_v25 = vsub.f32 %v2449_v1, %v2469_v12 }
0x1812   :  { %v2465_v14 = vpop.xlane.xlu0 %2464 }
0x1813   :  { %v2471_v16 = vmul.f32 0.03125, %v2465_v14  ;;  %v2761_v14 = vld [vmem:[%s4487_s16 + $0x8] sm:$0xff] }
0x1814   :  { %v3587_v15 = vpack.c.bf16 %v2761_v14, %v2760_v13 }
0x1815   :  { %v2475_v18 = vsub.f32 %v2471_v16, %v2473_v52  ;;  %v3830_v52 = vmov 0.0|0.0   ;;  %v2762_v16 = vld [vmem:[%s4487_s16 + $0x10] sm:$0xff] }
0x1816   :  { %v2468_v42 = vpop.xlane.xlu0 %2467  ;;  %3586 = vmatprep.subr.bf16.mxu1 %v3830_v52 }
0x1817   :  { %v2479_v22 = vadd.f32 1e-12, %v2475_v18  ;;  %v2472_v23 = vmul.f32 0.03125, %v2468_v42  ;;  %v2763_v18 = vld [vmem:[%s4487_s16 + $0x18] sm:$0xff] }
0x1818   :  { %v3590_v42 = vpack.c.bf16 %v2763_v18, %v2762_v16 }
0x1819   :  { %3776 = vrsqrt.f32 %v2479_v22  ;;  %v2476_v61 = vsub.f32 %v2472_v23, %v2474_v20  ;;  %v3832_v20 = vmov 0.0  }
0x181b   :  { %v2480_v24 = vadd.f32 1e-12, %v2476_v61 }
0x181d   :  { %3778 = vrsqrt.f32 %v2480_v24 }
0x1823   :  { %v3777_v62 = vpop.eup %3776 }
0x1824   :  { %v2483_v27 = vmul.f32 %v3777_v62, %v2477_v25 }
0x1826   :  { %v2491_v30 = vmul.f32 %v3028_v26, %v2483_v27 }
0x1827   :  { %v3779_v39 = vpop.eup %3778 }
0x1828   :  { %v2484_v33 = vmul.f32 %v3779_v39, %v2478_v29  ;;  %v2499_v34 = vadd.f32 %v3029_v28, %v2491_v30 }
0x182a   :  { %v2492_v35 = vmul.f32 %v3028_v26, %v2484_v33  ;;  %3382 = vmatprep.mubr.msk.f32.mxu1 %vm70_vm0, %v2499_v34 }
0x182c   :  { %v2500_v36 = vadd.f32 %v3029_v28, %v2492_v35 }
0x182e   :  { %3383 = vmatmul.mubr.msk.f32.vlgmr.msra.gmra.mrb[20].mxu1 %vm70_vm0, %v2500_v36 }
0x182f   :  { %3588 = vmatpush3.bf16.msra.mxu1 %v3587_v15  ;;  %3412 = vmatprep.mubr.msk.f32.mxu1 %vm3831_vm6, %v3832_v20 }
0x1830   :  { %3589 = vmatprep.subr.bf16.mxu1 %v3830_v52 }
0x1833   :  { %3591 = vmatpush3.bf16.msra.mxu1 %v3590_v42 }
0x1834   :  { %3592 = vmatprep.subr.bf16.mxu1 %v3830_v52 }
0x1901   :  { %v3384_v54 = vpop.f32.mrb[20].mxu1 }
0x1902   :  { %v2592_v58 = vadd.f32 %v3384_v54, %v3035_v45  ;;  %v2586_v57 = vpop.f32.mrb[21].mxu1  ;;  %v2846_v54 = vld [vmem:[%s4489_s18 + $0x8] sm:$0xff] }
0x1903   :  { %v2587_v21 = vadd.f32 %v3035_v45, %v2586_v57  ;;  %v2845_v45 = vld [vmem:[%s4489_s18] sm:$0xff] }
0x1904   :  { %v2598_v55 = vmul.f32 0.70710677, %v2592_v58  ;;  %v2596_v63 = vmul.f32 0.5, %v2592_v58  ;;  %v2847_v58 = vld [vmem:[%s4489_s18 + $0x10] sm:$0xff]  ;;  %v3593_v57 = vpack.c.bf16 %v2846_v54, %v2845_v45 }
0x1905   :  { %v2597_v19 = vmul.f32 0.70710677, %v2587_v21  ;;  %v2595_v31 = vmul.f32 0.5, %v2587_v21  ;;  %v2848_v21 = vld [vmem:[%s4489_s18 + $0x18] sm:$0xff]  ;;  %s3833_s18 = smov [#allocation2]  }
0x1906   :  { %3780 = verf.f32 %v2598_v55  ;;  %v3596_v55 = vpack.c.bf16 %v2848_v21, %v2847_v58  ;;  %s2936_s10 = sshll.u32 %s3833_s18, 4  ;;  %s2937_s10 = int_to_ptr.vmem [resolvable:$true] %s2936_s10 }
0x1907   :  { %3782 = verf.f32 %v2597_v19  ;;  %v3054_v19 = vld [vmem:[%s4488_s17] ss:$0 sm:$0xff]  ;;  %s3792_s11 = scalar_lea.vmem %s2937_s10, 32  ;;  %p3797_p1 = scmp.lt.s32.totalorder %s2937_s10, %s2937_s10 }
0x1908   :  { %p3793_p0 = scmp.ne.s32.totalorder %s2937_s10, %s3792_s11  ;;  %p3798_p2 = scmp.lt.s32.totalorder %s3792_s11, %s3792_s11 }
0x190a   :  { %p3799_p3 = por %p3798_p2, %p3797_p1 }
0x190c   :  { %p3800_p4 = pnand %p3799_p3, %p3793_p0 }
0x1910   :  { %v3781_v32 = vpop.eup %3780 }
0x1911   :  { %v3783_v56 = vpop.eup %3782  ;;  %v2602_v59 = vadd.f32 1.0, %v3781_v32 }
0x1912   :  { %v2601_v60 = vadd.f32 1.0, %v3783_v56 }
0x1913   :  { %v2604_v2 = vmul.f32 %v2602_v59, %v2596_v63 }
0x1914   :  { %v2603_v1 = vmul.f32 %v2601_v60, %v2595_v31  ;;  %v3056_v60 = vld [vmem:[%s4490_s19] ss:$0 sm:$0xff] }
0x1916   :  { %3401 = vmatprep.mubr.msk.f32.mxu0 %vm1301_vm5, %v2603_v1 }
0x1917   :  { %3402 = vmatmul.mubr.msk.f32.vlgmr.msra.gmra.mrb[24].mxu0 %vm1301_vm5, %v2604_v2 }
0x19ea   :  { %v3403_v4 = vpop.f32.mrb[24].mxu0 }
0x19eb   :  { %v2700_v5 = vadd.f32 %v3403_v4, %v3047_v3  ;;  %v2694_v0 = vpop.f32.mrb[25].mxu0 }
0x19ec   :  { %v2695_v6 = vadd.f32 %v3047_v3, %v2694_v0 }
0x19ed   :  { %v2704_v44 = vadd.f32 %v2700_v5, %v2500_v36 }
0x19ee   :  { %v2703_v17 = vadd.f32 %v2695_v6, %v2499_v34 }
0x19ef   :  { %v2712_v7 = vsel %vm70_vm0, %v2704_v44, 0.0  ;;  %v2716_v8 = vmul.f32 %v2704_v44, %v2704_v44 }
0x19f0   :  { %2713 = vadd.xlane.f32.xlu0 %v2712_v7  ;;  %v2709_v9 = vsel %vm70_vm0, %v2703_v17, 0.0  ;;  %v2715_v10 = vmul.f32 %v2703_v17, %v2703_v17 }
0x19f1   :  { %2710 = vadd.xlane.f32.xlu1 %v2709_v9  ;;  %v2720_v11 = vsel %vm70_vm0, %v2716_v8, 0.0 }
0x19f2   :  { %v2717_v12 = vsel %vm70_vm0, %v2715_v10, 0.0 }
0x19f4   :  { %2721 = vadd.xlane.f32.xlu0 %v2720_v11 }
0x19f5   :  { %2718 = vadd.xlane.f32.xlu1 %v2717_v12 }
0x1a7d   :  { %v2714_v22 = vpop.xlane.xlu0 %2713 }
0x1a7e   :  { %v2724_v23 = vmul.f32 0.03125, %v2714_v22  ;;  %v2711_v61 = vpop.xlane.xlu1 %2710 }
0x1a7f   :  { %v2723_v24 = vmul.f32 0.03125, %v2711_v61 }
0x1a80   :  { %v2728_v62 = vmul.f32 %v2724_v23, %v2724_v23  ;;  %v2732_v35 = vsub.f32 %v2704_v44, %v2724_v23 }
0x1a81   :  { %v2722_v25 = vpop.xlane.xlu0 %2721  ;;  %v2727_v28 = vmul.f32 %v2723_v24, %v2723_v24  ;;  %v2731_v37 = vsub.f32 %v2703_v17, %v2723_v24 }
0x1a82   :  { %v2726_v26 = vmul.f32 0.03125, %v2722_v25  ;;  %v2719_v27 = vpop.xlane.xlu1 %2718 }
0x1a83   :  { %v2725_v29 = vmul.f32 0.03125, %v2719_v27 }
0x1a84   :  { %v2730_v30 = vsub.f32 %v2726_v26, %v2728_v62 }
0x1a85   :  { %v2729_v39 = vsub.f32 %v2725_v29, %v2727_v28 }
0x1a86   :  { %v2734_v33 = vadd.f32 1e-12, %v2730_v30 }
0x1a87   :  { %v2733_v34 = vadd.f32 1e-12, %v2729_v39 }
0x1a88   :  { %3784 = vrsqrt.f32 %v2734_v33 }
0x1a89   :  { %3786 = vrsqrt.f32 %v2733_v34 }
0x1a92   :  { %v3785_v36 = vpop.eup %3784 }
0x1a93   :  { %v3787_v40 = vpop.eup %3786  ;;  %v2738_v41 = vmul.f32 %v3785_v36, %v2732_v35 }
0x1a94   :  { %v2737_v43 = vmul.f32 %v3787_v40, %v2731_v37 }
0x1a95   :  { %v2746_v47 = vmul.f32 %v3052_v38, %v2738_v41 }
0x1a96   :  { %v2745_v48 = vmul.f32 %v3052_v38, %v2737_v43 }
0x1a97   :  { %v2754_v49 = vadd.f32 %v3053_v46, %v2746_v47 }
0x1a98   :  { %v2753_v50 = vadd.f32 %v3053_v46, %v2745_v48 }
0x1a99   :  { %v2756_v51 = vrot.slane %v2754_v49, 7 }
0x1a9b   :  { %v2759_v53 = vsel %vm2758_vm7, %v2753_v50, %v2756_v51 }
0x1a9c   :  { %3413 = vmatmul.mubr.msk.f32.vlgmr.msra.gmra.mrb[22].mxu1 %vm70_vm0, %v2759_v53 }
0x1a9d   :  { %3423 = vmatprep.mubr.msk.f32.mxu1 %vm3831_vm6, %v3832_v20  ;;  %3594 = vmatpush3.bf16.msra.mxu1 %v3593_v57 }
0x1a9e   :  { %3595 = vmatprep.subr.bf16.mxu1 %v3830_v52 }
0x1aa1   :  { %3597 = vmatpush3.bf16.msra.mxu1 %v3596_v55 }
0x1b6f   :  { %v2840_v32 = vpop.f32.mrb[22].mxu1 }
0x1b70   :  { %v2841_v56 = vadd.f32 %v3054_v19, %v2840_v32  ;;  %v3414_v59 = vpop.f32.mrb[23].mxu1 }
0x1b72   :  { %3788 = vtanh.f32 %v2841_v56 }
0x1b7c   :  { %v3789_v31 = vpop.eup %3788 }
0x1b7d   :  { %3424 = vmatmul.mubr.msk.f32.vlgmr.msra.gmra.mrb[24].mxu1 %vm70_vm0, %v3789_v31 }
0x1c50   :  { %v2925_v63 = vpop.f32.mrb[24].mxu1 }
0x1c51   :  { %v2926_v1 = vadd.f32 %v3056_v60, %v2925_v63  ;;  %v3425_v2 = vpop.f32.mrb[25].mxu1 }
0x1c53   :  { %2929 = vst [vmem:[#allocation2] sm:$0x3] %v2926_v1 }
0x1c54   :  { %3803 = shalt.err (!%p3800_p4)
}
0x1c55   :  { %s3804_s13 = scalar_lea.hbm %s4491_s20, 32 }
0x1c56   :  { %p3805_p5 = scmp.ne.s32.totalorder %s4491_s20, %s3804_s13  ;;  %p3808_p6 = scmp.lt.u32.totalorder %s3804_s13, %s4491_s20 }
0x1c58   :  { %p3810_p7 = pnand %p3808_p6, %p3805_p5 }
0x1c5a   :  { %3813 = shalt.err (!%p3810_p7)
}
0x1c5b   :  { %2939 = dma.vmem_to_hbm [thread:$0]  %s2937_s10, 32, %s4491_s20, [#allocation3]  }
0x1c5c   :  { %3814 = dma.done.wait [#allocation3], 32  }
0x1c5d   :  { %3815 = vsyncadd [#allocation3], 4294967264 }
0x1c5e   :  { %2943 = vsyncpa [#allocation3], 1 }

</bundles_post_ra>
